<compile_context>
chip_gen: v7x
topology: tpu7x:2x2x1
jax: 0.10.0
libtpu: 0.0.40
codegen_flags: <defaults>
</compile_context>

<pallas_src>
import functools

import jax
import jax.numpy as jnp
from jax import lax
from jax.experimental import pallas as pl
from jax.experimental.pallas import tpu as pltpu

BN_EPS = 1e-5  # PyTorch BatchNorm2d default


# --------------------------------------------------------------------------- kernels
def _conv_kernel(xs_ref, w_ref, y_ref, stats_ref):
    """One (image, row-block) tile of the polyphase upsample+conv.

    xs_ref   : (TL+2, W+2, Cin)   zero-padded low-res slab (1 halo row/col each side)
    w_ref    : (9*Cin, 4*Cout)    folded weights: (tap, Cin) -> (phase, Cout)
    y_ref    : (TL*W, 4*Cout)     conv output; rows=(t, w), cols=(phase, cout)
    stats_ref: (2, 4*Cout)        per-tile column sum / sum-of-squares (BN partials)
    """
    TLp2, Wp2, Cin = xs_ref.shape
    TL, W = TLp2 - 2, Wp2 - 2
    xs = xs_ref[...]

    # im2col over the 9 tap shifts, folded into the contraction dim (K = 9*Cin),
    # instead of 9 separate shifted-copy matmuls with K = Cin.
    taps = [xs[ry:ry + TL, rx:rx + W, :] for ry in range(3) for rx in range(3)]
    patch = jnp.concatenate(taps, axis=-1).reshape(TL * W, 9 * Cin)

    # Single MXU matmul produces all 4 output phases at once (f32 accumulation).
    acc = jnp.dot(patch, w_ref[...], preferred_element_type=jnp.float32)

    # BN partial sums in the same pass (no second sweep over acc).
    s1 = jnp.sum(acc, axis=0, keepdims=True)
    s2 = jnp.sum(acc * acc, axis=0, keepdims=True)
    stats_ref[...] = jnp.concatenate([s1, s2], axis=0)

    y_ref[...] = acc


def _bn_relu_kernel(y_ref, scale_ref, shift_ref, o_ref):
    """Apply precomputed per-channel BatchNorm scale/shift + ReLU (in place via aliasing)."""
    o_ref[...] = jnp.maximum(y_ref[...] * scale_ref[...] + shift_ref[...], 0.0)


# --------------------------------------------------------------------------- helpers
def _fold_polyphase_weights(w_hwio):
    """(3,3,Cin,Cout) conv weights -> (9*Cin, 4*Cout) polyphase matrix.

    Output phase (a,b) of the conv over the x2-upsampled image only touches low-res
    taps (ry, rx) = (floor((a+ky-1)/2)+1, floor((b+kx-1)/2)+1); weights whose taps
    collapse onto the same low-res pixel are summed.  Unused (ry,rx) slots per phase
    stay zero (a 9/4 MAC overhead traded for one shared im2col patch + one matmul).
    """
    Cin, Cout = w_hwio.shape[2], w_hwio.shape[3]
    w_eff = jnp.zeros((3, 3, Cin, 2, 2, Cout), jnp.float32)
    for a in range(2):
        for ky in range(3):
            ry = (a + ky - 1) // 2 + 1
            for b in range(2):
                for kx in range(3):
                    rx = (b + kx - 1) // 2 + 1
                    w_eff = w_eff.at[ry, rx, :, a, b, :].add(
                        w_hwio[ky, kx].astype(jnp.float32))
    return w_eff.reshape(9 * Cin, 4 * Cout)


def _pick_tile_rows(H, W, Cin, Cout, vmem_budget_bytes=8 * 1024 * 1024):
    """Largest divisor of H whose per-step working set fits a conservative budget
    (double-buffered in/out tiles + im2col patch), sized to stay well inside v7x's
    64 MiB VMEM with the 48 MiB scoped limit requested below."""
    best = 1
    for tl in range(1, H + 1):
        if H % tl:
            continue
        slab = (tl + 2) * (W + 2) * Cin * 4
        ytile = tl * W * 4 * Cout * 4
        patch = tl * W * 9 * Cin * 4
        if 2 * slab + 3 * ytile + patch <= vmem_budget_bytes:
            best = tl
    return best


# --------------------------------------------------------------------------- forward
@functools.partial(jax.jit, static_argnames=("tile_rows", "compute_dtype"))
def up_conv_forward(x_nchw, w_hwio, b, gamma, beta, *, tile_rows=None,
                    compute_dtype=jnp.float32):
    del b  # conv bias cancels exactly under training-mode BatchNorm (mean subtraction).
    N, Cin, H, W = x_nchw.shape
    Cout = w_hwio.shape[-1]
    Hu, Wu = 2 * H, 2 * W
    KC = 9 * Cin     # folded contraction dim (taps x Cin)
    PC = 4 * Cout    # folded output dim (phases x Cout)

    if tile_rows is None:
        TL = _pick_tile_rows(H, W, Cin, Cout)
    else:
        TL = max(d for d in range(1, min(tile_rows, H) + 1) if H % d == 0)
    HB = H // TL
    R = TL * W

    # ---- wrapper layout glue (all on the small LOW-RES tensor) ----
    x = jnp.transpose(x_nchw, (0, 2, 3, 1)).astype(compute_dtype)      # NHWC
    xp = jnp.pad(x, ((0, 0), (1, 1), (1, 1), (0, 0)))                  # low-res zero pad
    # Halo'd row slabs (2 duplicated rows per block) so each grid step is one
    # contiguous, auto-pipelined BlockSpec block.
    x_slabs = jnp.stack([xp[:, k * TL:k * TL + TL + 2] for k in range(HB)], axis=1)
    w_mat = _fold_polyphase_weights(w_hwio).astype(compute_dtype)

    # ---- pass 1: polyphase conv + BN partial sums ----
    conv_cost = pl.CostEstimate(
        flops=2 * N * H * W * KC * PC, transcendentals=0,
        bytes_accessed=(x_slabs.size * x_slabs.dtype.itemsize
                        + w_mat.size * w_mat.dtype.itemsize
                        + N * H * W * PC * 4 + N * HB * 2 * PC * 4))
    y, stats = pl.pallas_call(
        _conv_kernel,
        grid=(N, HB),
        in_specs=[
            pl.BlockSpec((None, None, TL + 2, W + 2, Cin),
                         lambda n, h: (n, h, 0, 0, 0)),
            pl.BlockSpec((KC, PC), lambda n, h: (0, 0)),
        ],
        out_specs=[
            pl.BlockSpec((None, None, R, PC), lambda n, h: (n, h, 0, 0)),
            pl.BlockSpec((None, None, 2, PC), lambda n, h: (n, h, 0, 0)),
        ],
        out_shape=(
            jax.ShapeDtypeStruct((N, HB, R, PC), jnp.float32),
            jax.ShapeDtypeStruct((N, HB, 2, PC), jnp.float32),
        ),
        compiler_params=pltpu.CompilerParams(
            dimension_semantics=("parallel", "parallel"),
            vmem_limit_bytes=48 * 1024 * 1024),
        cost_estimate=conv_cost,
    )(x_slabs, w_mat)

    # ---- cross-tile BatchNorm reduction (tiny: (N*HB, 2, 4*Cout) floats) ----
    tot = jnp.sum(stats, axis=(0, 1))                        # (2, 4*Cout)
    count = N * Hu * Wu
    s1 = jnp.sum(tot[0].reshape(4, Cout), axis=0)            # group phases per channel
    s2 = jnp.sum(tot[1].reshape(4, Cout), axis=0)
    mean = s1 / count
    var = jnp.maximum(s2 / count - mean * mean, 0.0)         # biased (training) variance
    inv = lax.rsqrt(var + BN_EPS)
    scale = gamma.astype(jnp.float32) * inv
    shift = beta.astype(jnp.float32) - mean * scale
    scale_pc = jnp.tile(scale, 4)[None, :]                   # per output column of y
    shift_pc = jnp.tile(shift, 4)[None, :]

    # ---- pass 2: normalize + ReLU, in place over y (input/output aliasing) ----
    bn_cost = pl.CostEstimate(flops=3 * N * H * W * PC, transcendentals=0,
                              bytes_accessed=2 * N * H * W * PC * 4)
    out = pl.pallas_call(
        _bn_relu_kernel,
        grid=(N, HB),
        in_specs=[
            pl.BlockSpec((None, None, R, PC), lambda n, h: (n, h, 0, 0)),
            pl.BlockSpec((1, PC), lambda n, h: (0, 0)),
            pl.BlockSpec((1, PC), lambda n, h: (0, 0)),
        ],
        out_specs=pl.BlockSpec((None, None, R, PC), lambda n, h: (n, h, 0, 0)),
        out_shape=jax.ShapeDtypeStruct((N, HB, R, PC), jnp.float32),
        input_output_aliases={0: 0},
        compiler_params=pltpu.CompilerParams(
            dimension_semantics=("parallel", "parallel"),
            vmem_limit_bytes=48 * 1024 * 1024),
        cost_estimate=bn_cost,
    )(y, scale_pc, shift_pc)

    # ---- wrapper-side phase interleave + NCHW (pure layout plumbing) ----
    out = out.reshape(N, HB, TL, W, 2, 2, Cout)              # (n, hb, t, w, a, b, c)
    out = jnp.transpose(out, (0, 6, 1, 2, 4, 3, 5))          # (n, c, hb, t, a, w, b)
    return out.reshape(N, Cout, Hu, Wu)


# --------------------------------------------------------------------------- reference
def up_conv_reference(x_nchw, w_hwio, b, gamma, beta):
    """Pure-JAX reference with the exact module semantics (incl. conv bias)."""
    x = jnp.transpose(x_nchw, (0, 2, 3, 1)).astype(jnp.float32)
    x = jnp.repeat(jnp.repeat(x, 2, axis=1), 2, axis=2)       # nearest x2
    y = lax.conv_general_dilated(
        x, w_hwio.astype(jnp.float32), window_strides=(1, 1),
        padding=((1, 1), (1, 1)),
        dimension_numbers=("NHWC", "HWIO", "NHWC"))
    y = y + b
    mean = jnp.mean(y, axis=(0, 1, 2), keepdims=True)
    var = jnp.mean((y - mean) ** 2, axis=(0, 1, 2), keepdims=True)
    y = (y - mean) * lax.rsqrt(var + BN_EPS) * gamma + beta
    y = jnp.maximum(y, 0.0)
    return jnp.transpose(y, (0, 3, 1, 2))


if __name__ == "__main__":
    key = jax.random.PRNGKey(0)
    k_x, k_w, k_b, k_g, k_bt = jax.random.split(key, 5)

    # small shapes consistent with the module: in_ch=4, out_ch=8, NCHW input
    N, Cin, Cout, H, W = 2, 4, 8, 16, 16
    x = jax.random.normal(k_x, (N, Cin, H, W), jnp.float32)

    # deterministic parameter init (PyTorch-like uniform bounds)
    fan_in = Cin * 3 * 3
    bound = 1.0 / (fan_in ** 0.5)
    w_hwio = jax.random.uniform(k_w, (3, 3, Cin, Cout), jnp.float32, -bound, bound)
    b = jax.random.uniform(k_b, (Cout,), jnp.float32, -bound, bound)
    gamma = 1.0 + 0.1 * jax.random.normal(k_g, (Cout,), jnp.float32)
    beta = 0.1 * jax.random.normal(k_bt, (Cout,), jnp.float32)

    # tile_rows=8 -> grid = (N, 2): exercises the pipelined multi-step grid.
    out = up_conv_forward(x, w_hwio, b, gamma, beta, tile_rows=8)
    out = jax.block_until_ready(out)

    ref = up_conv_reference(x, w_hwio, b, gamma, beta)
    assert out.shape == (N, Cout, 2 * H, 2 * W), out.shape
    err = float(jnp.max(jnp.abs(out - ref)))
    assert jnp.allclose(out, ref, atol=5e-4, rtol=5e-4), err

    print("KERNEL_OK")
</pallas_src>

<mosaic_0001>
module attributes {stable_mosaic.version = 11 : i64} {
  func.func @_conv_kernel(%arg0: i32, %arg1: i32, %arg2: memref<1x1x10x18x4xf32, #tpu.memory_space<vmem>>, %arg3: memref<36x32xf32, #tpu.memory_space<vmem>>, %arg4: memref<1x1x128x32xf32, #tpu.memory_space<vmem>>, %arg5: memref<1x1x2x32xf32, #tpu.memory_space<vmem>>) attributes {dimension_semantics = [#tpu.dimension_semantics<parallel>, #tpu.dimension_semantics<parallel>], iteration_bounds = array<i64: 2, 2>, scalar_prefetch = 0 : i64, scratch_operands = 0 : i64, tpu.core_type = #tpu.core_type<tc>, window_params = [{transform_indices = @transform_0, window_bounds = array<i64: 1, 1, 10, 18, 4>}, {pipeline_mode = #tpu.pipeline_mode<synchronous>, transform_indices = @transform_1, window_bounds = array<i64: 36, 32>}, {transform_indices = @transform_2, window_bounds = array<i64: 1, 1, 128, 32>}, {transform_indices = @transform_3, window_bounds = array<i64: 1, 1, 2, 32>}]} {
    %c0 = arith.constant 0 : index
    %c0_0 = arith.constant 0 : index
    %c0_1 = arith.constant 0 : index
    %c0_2 = arith.constant 0 : index
    %c0_3 = arith.constant 0 : index
    %0 = vector.load %arg2[%c0, %c0_0, %c0_1, %c0_2, %c0_3] : memref<1x1x10x18x4xf32, #tpu.memory_space<vmem>>, vector<1x1x10x18x4xf32>
    %1 = vector.shape_cast %0 : vector<1x1x10x18x4xf32> to vector<10x18x4xf32>
    %2 = vector.extract_strided_slice %1 {offsets = [0, 0, 0], sizes = [8, 16, 4], strides = [1, 1, 1]} : vector<10x18x4xf32> to vector<8x16x4xf32>
    %3 = vector.extract_strided_slice %1 {offsets = [0, 1, 0], sizes = [8, 16, 4], strides = [1, 1, 1]} : vector<10x18x4xf32> to vector<8x16x4xf32>
    %4 = vector.extract_strided_slice %1 {offsets = [0, 2, 0], sizes = [8, 16, 4], strides = [1, 1, 1]} : vector<10x18x4xf32> to vector<8x16x4xf32>
    %5 = vector.extract_strided_slice %1 {offsets = [1, 0, 0], sizes = [8, 16, 4], strides = [1, 1, 1]} : vector<10x18x4xf32> to vector<8x16x4xf32>
    %6 = vector.extract_strided_slice %1 {offsets = [1, 1, 0], sizes = [8, 16, 4], strides = [1, 1, 1]} : vector<10x18x4xf32> to vector<8x16x4xf32>
    %7 = vector.extract_strided_slice %1 {offsets = [1, 2, 0], sizes = [8, 16, 4], strides = [1, 1, 1]} : vector<10x18x4xf32> to vector<8x16x4xf32>
    %8 = vector.extract_strided_slice %1 {offsets = [2, 0, 0], sizes = [8, 16, 4], strides = [1, 1, 1]} : vector<10x18x4xf32> to vector<8x16x4xf32>
    %9 = vector.extract_strided_slice %1 {offsets = [2, 1, 0], sizes = [8, 16, 4], strides = [1, 1, 1]} : vector<10x18x4xf32> to vector<8x16x4xf32>
    %10 = vector.extract_strided_slice %1 {offsets = [2, 2, 0], sizes = [8, 16, 4], strides = [1, 1, 1]} : vector<10x18x4xf32> to vector<8x16x4xf32>
    %11 = tpu.concatenate %2, %3, %4, %5, %6, %7, %8, %9, %10 in 2 : vector<8x16x4xf32>, vector<8x16x4xf32>, vector<8x16x4xf32>, vector<8x16x4xf32>, vector<8x16x4xf32>, vector<8x16x4xf32>, vector<8x16x4xf32>, vector<8x16x4xf32>, vector<8x16x4xf32> -> vector<8x16x36xf32>
    %12 = vector.shape_cast %11 : vector<8x16x36xf32> to vector<128x36xf32>
    %c0_4 = arith.constant 0 : index
    %c0_5 = arith.constant 0 : index
    %13 = vector.load %arg3[%c0_4, %c0_5] : memref<36x32xf32, #tpu.memory_space<vmem>>, vector<36x32xf32>
    %cst = arith.constant dense<0.000000e+00> : vector<128x32xf32>
    %14 = tpu.matmul %12, %13, %cst {dimension_numbers = #tpu.dot_dimension_numbers<[1], [0], [0], [1], [0, 0, 1, 1], [], []>} : vector<128x36xf32>, vector<36x32xf32>, vector<128x32xf32> -> vector<128x32xf32>
    %cst_6 = arith.constant dense<0.000000e+00> : vector<32xf32>
    %15 = vector.multi_reduction <add>, %14, %cst_6 [0] : vector<128x32xf32> to vector<32xf32>
    %16 = vector.shape_cast %15 : vector<32xf32> to vector<1x32xf32>
    %17 = arith.mulf %14, %14 : vector<128x32xf32>
    %cst_7 = arith.constant dense<0.000000e+00> : vector<32xf32>
    %18 = vector.multi_reduction <add>, %17, %cst_7 [0] : vector<128x32xf32> to vector<32xf32>
    %19 = vector.shape_cast %18 : vector<32xf32> to vector<1x32xf32>
    %20 = tpu.concatenate %16, %19 in 0 : vector<1x32xf32>, vector<1x32xf32> -> vector<2x32xf32>
    %c0_8 = arith.constant 0 : index
    %c0_9 = arith.constant 0 : index
    %c0_10 = arith.constant 0 : index
    %c0_11 = arith.constant 0 : index
    %21 = vector.load %arg5[%c0_8, %c0_9, %c0_10, %c0_11] : memref<1x1x2x32xf32, #tpu.memory_space<vmem>>, vector<1x1x2x32xf32>
    %22 = vector.shape_cast %21 : vector<1x1x2x32xf32> to vector<2x32xf32>
    %23 = vector.shape_cast %20 : vector<2x32xf32> to vector<1x1x2x32xf32>
    tpu.vector_store %arg5[%c0_8, %c0_9, %c0_10, %c0_11], %23 {strides = array<i32>} : memref<1x1x2x32xf32, #tpu.memory_space<vmem>>, vector<1x1x2x32xf32>,
    %c0_12 = arith.constant 0 : index
    %c0_13 = arith.constant 0 : index
    %c0_14 = arith.constant 0 : index
    %c0_15 = arith.constant 0 : index
    %24 = vector.load %arg4[%c0_12, %c0_13, %c0_14, %c0_15] : memref<1x1x128x32xf32, #tpu.memory_space<vmem>>, vector<1x1x128x32xf32>
    %25 = vector.shape_cast %24 : vector<1x1x128x32xf32> to vector<128x32xf32>
    %26 = vector.shape_cast %14 : vector<128x32xf32> to vector<1x1x128x32xf32>
    tpu.vector_store %arg4[%c0_12, %c0_13, %c0_14, %c0_15], %26 {strides = array<i32>} : memref<1x1x128x32xf32, #tpu.memory_space<vmem>>, vector<1x1x128x32xf32>,
    return
  }
  func.func @transform_0(%arg0: i32, %arg1: i32) -> (i32, i32, i32, i32, i32) {
    %c0_i32 = arith.constant 0 : i32
    %c0_i32_0 = arith.constant 0 : i32
    %c0_i32_1 = arith.constant 0 : i32
    %c0_i32_2 = arith.constant 0 : i32
    return %arg0, %arg1, %c0_i32, %c0_i32_0, %c0_i32_1 : i32, i32, i32, i32, i32
  }
  func.func @transform_1(%arg0: i32, %arg1: i32) -> (i32, i32) {
    %c0_i32 = arith.constant 0 : i32
    %c0_i32_0 = arith.constant 0 : i32
    %c0_i32_1 = arith.constant 0 : i32
    return %c0_i32, %c0_i32_0 : i32, i32
  }
  func.func @transform_2(%arg0: i32, %arg1: i32) -> (i32, i32, i32, i32) {
    %c0_i32 = arith.constant 0 : i32
    %c0_i32_0 = arith.constant 0 : i32
    %c0_i32_1 = arith.constant 0 : i32
    return %arg0, %arg1, %c0_i32, %c0_i32_0 : i32, i32, i32, i32
  }
  func.func @transform_3(%arg0: i32, %arg1: i32) -> (i32, i32, i32, i32) {
    %c0_i32 = arith.constant 0 : i32
    %c0_i32_0 = arith.constant 0 : i32
    %c0_i32_1 = arith.constant 0 : i32
    return %arg0, %arg1, %c0_i32, %c0_i32_0 : i32, i32, i32, i32
  }
}

module attributes {stable_mosaic.version = 11 : i64} {
  func.func @_bn_relu_kernel(%arg0: i32, %arg1: i32, %arg2: memref<1x1x128x32xf32, #tpu.memory_space<vmem>>, %arg3: memref<1x32xf32, #tpu.memory_space<vmem>>, %arg4: memref<1x32xf32, #tpu.memory_space<vmem>>, %arg5: memref<1x1x128x32xf32, #tpu.memory_space<vmem>>) attributes {dimension_semantics = [#tpu.dimension_semantics<parallel>, #tpu.dimension_semantics<parallel>], iteration_bounds = array<i64: 2, 2>, scalar_prefetch = 0 : i64, scratch_operands = 0 : i64, tpu.core_type = #tpu.core_type<tc>, window_params = [{transform_indices = @transform_0, window_bounds = array<i64: 1, 1, 128, 32>}, {pipeline_mode = #tpu.pipeline_mode<synchronous>, transform_indices = @transform_1, window_bounds = array<i64: 1, 32>}, {pipeline_mode = #tpu.pipeline_mode<synchronous>, transform_indices = @transform_2, window_bounds = array<i64: 1, 32>}, {transform_indices = @transform_3, window_bounds = array<i64: 1, 1, 128, 32>}]} {
    %c0 = arith.constant 0 : index
    %c0_0 = arith.constant 0 : index
    %c0_1 = arith.constant 0 : index
    %c0_2 = arith.constant 0 : index
    %0 = vector.load %arg2[%c0, %c0_0, %c0_1, %c0_2] : memref<1x1x128x32xf32, #tpu.memory_space<vmem>>, vector<1x1x128x32xf32>
    %1 = vector.shape_cast %0 : vector<1x1x128x32xf32> to vector<128x32xf32>
    %c0_3 = arith.constant 0 : index
    %c0_4 = arith.constant 0 : index
    %2 = vector.load %arg3[%c0_3, %c0_4] : memref<1x32xf32, #tpu.memory_space<vmem>>, vector<1x32xf32>
    %3 = vector.broadcast %2 : vector<1x32xf32> to vector<128x32xf32>
    %4 = arith.mulf %1, %3 : vector<128x32xf32>
    %c0_5 = arith.constant 0 : index
    %c0_6 = arith.constant 0 : index
    %5 = vector.load %arg4[%c0_5, %c0_6] : memref<1x32xf32, #tpu.memory_space<vmem>>, vector<1x32xf32>
    %6 = vector.broadcast %5 : vector<1x32xf32> to vector<128x32xf32>
    %7 = arith.addf %4, %6 : vector<128x32xf32>
    %cst = arith.constant 0.000000e+00 : f32
    %8 = vector.broadcast %cst : f32 to vector<128x32xf32>
    %9 = arith.maximumf %7, %8 : vector<128x32xf32>
    %c0_7 = arith.constant 0 : index
    %c0_8 = arith.constant 0 : index
    %c0_9 = arith.constant 0 : index
    %c0_10 = arith.constant 0 : index
    %10 = vector.load %arg5[%c0_7, %c0_8, %c0_9, %c0_10] : memref<1x1x128x32xf32, #tpu.memory_space<vmem>>, vector<1x1x128x32xf32>
    %11 = vector.shape_cast %10 : vector<1x1x128x32xf32> to vector<128x32xf32>
    %12 = vector.shape_cast %9 : vector<128x32xf32> to vector<1x1x128x32xf32>
    tpu.vector_store %arg5[%c0_7, %c0_8, %c0_9, %c0_10], %12 {strides = array<i32>} : memref<1x1x128x32xf32, #tpu.memory_space<vmem>>, vector<1x1x128x32xf32>,
    return
  }
  func.func @transform_0(%arg0: i32, %arg1: i32) -> (i32, i32, i32, i32) {
    %c0_i32 = arith.constant 0 : i32
    %c0_i32_0 = arith.constant 0 : i32
    %c0_i32_1 = arith.constant 0 : i32
    return %arg0, %arg1, %c0_i32, %c0_i32_0 : i32, i32, i32, i32
  }
  func.func @transform_1(%arg0: i32, %arg1: i32) -> (i32, i32) {
    %c0_i32 = arith.constant 0 : i32
    %c0_i32_0 = arith.constant 0 : i32
    %c0_i32_1 = arith.constant 0 : i32
    return %c0_i32, %c0_i32_0 : i32, i32
  }
  func.func @transform_2(%arg0: i32, %arg1: i32) -> (i32, i32) {
    %c0_i32 = arith.constant 0 : i32
    %c0_i32_0 = arith.constant 0 : i32
    %c0_i32_1 = arith.constant 0 : i32
    return %c0_i32, %c0_i32_0 : i32, i32
  }
  func.func @transform_3(%arg0: i32, %arg1: i32) -> (i32, i32, i32, i32) {
    %c0_i32 = arith.constant 0 : i32
    %c0_i32_0 = arith.constant 0 : i32
    %c0_i32_1 = arith.constant 0 : i32
    return %arg0, %arg1, %c0_i32, %c0_i32_0 : i32, i32, i32, i32
  }
}

</mosaic_0001>

<bundles_post_ra>
// kernel: squeeze.74
= control target key start
LH: loop header
LB: loop body
LE: loop exit
PB: predicated region body
PF: predicated region fallthrough
CT: control target
= control target key end

     0   :  { %s37_s8 = smov 104   ;;  %vm7_vm0 = vcmask 64512   ;;  %s38_s9 = smov 112   ;;  %s55_s0 = inlined_call_operand.vmem [shape: f32[32], index: 0, kind: input, shape index: {}]   ;;  %s56_s1 = inlined_call_operand.vmem [shape: f32[4,8], index: 1, kind: output, shape index: {}]  }
   0x1   :  { %v4_v0 = vld [vmem:[%s55_s0] sm:$0x1]  ;;  %s36_s0 = smov 120  }
   0x2   :  { %5 = vst [vmem:[#allocation1] sm:$0x1] %v4_v0 }
   0x9   :  { %v9_v1 = vld [vmem:[#allocation1] sm:$0x1]  }
   0xa   :  { %v21_v2 = vld [vmem:[#allocation1] sm:$0x1]   ;;  %10 = vrot.lane.b32.xlu0 %v9_v1, %s36_s0 }
   0xb   :  { %22 = vrot.lane.b32.xlu1 %v21_v2, %s37_s8  ;;  %v6_v3 = vld [vmem:[#allocation1] sm:$0x1]  }
   0xc   :  { %v15_v4 = vld [vmem:[#allocation1] sm:$0x1]   ;;  %8 = vst.msk [vmem:[#allocation0] sm:$0x1] %vm7_vm0, %v6_v3  }
   0xe   :  { %16 = vrot.lane.b32.xlu0 %v15_v4, %s38_s9 }
  0x7c   :  { %v11_v5 = vpop.permute.xlu0 %10  }
  0x7d   :  { %v23_v6 = vpop.permute.xlu1 %22   ;;  %14 = vst.msk [vmem:[#allocation0 + $0x1] sm:$0x1] %vm7_vm0, %v11_v5  }
  0x7e   :  { %26 = vst.msk [vmem:[#allocation0 + $0x3] sm:$0x1] %vm7_vm0, %v23_v6  }
  0x80   :  { %v17_v7 = vpop.permute.xlu0 %16  }
  0x81   :  { %20 = vst.msk [vmem:[#allocation0 + $0x2] sm:$0x1] %vm7_vm0, %v17_v7  }
  0x88   :  { %v30_v8 = vld [vmem:[#allocation0] sm:$0xf] }
  0x89   :  { %32 = vst [vmem:[%s56_s1] sm:$0xf] %v30_v8 }

// kernel: tile.18
= control target key start
LH: loop header
LB: loop body
LE: loop exit
PB: predicated region body
PF: predicated region fallthrough
CT: control target
= control target key end

     0   :  { %s22_s0 = inlined_call_operand.vmem [shape: f32[8], index: 0, kind: input, shape index: {}]   ;;  %s23_s1 = inlined_call_operand.vmem [shape: f32[4,8], index: 1, kind: output, shape index: {}]  }
   0x1   :  { %v4_v0 = vld [vmem:[%s22_s0] ss:$0 sm:$0xff] }
   0x2   :  { %5 = vst [vmem:[%s23_s1] sm:$0xf] %v4_v0 }

// kernel: tile.19
= control target key start
LH: loop header
LB: loop body
LE: loop exit
PB: predicated region body
PF: predicated region fallthrough
CT: control target
= control target key end

     0   :  { %vm7_vm0 = vcmask 64512   ;;  %s37_s8 = smov 8   ;;  %s38_s9 = smov 16   ;;  %vm13_vm1 = vcmask 261312   ;;  %vm19_vm2 = vcmask 195712   ;;  %vm25_vm3 = vcmask 130112   ;;  %s55_s0 = inlined_call_operand.vmem [shape: f32[4,8], index: 0, kind: input, shape index: {}]   ;;  %s56_s1 = inlined_call_operand.vmem [shape: f32[1,32], index: 1, kind: output, shape index: {}]  }
   0x1   :  { %v4_v0 = vld [vmem:[%s55_s0] sm:$0xf]  ;;  %s36_s0 = smov 24  }
   0x2   :  { %5 = vst [vmem:[#allocation1] sm:$0xf] %v4_v0 }
   0x9   :  { %v10_v1 = vld [vmem:[#allocation1 + $0x3] sm:$0x1]   ;;  %v22_v2 = vld [vmem:[#allocation1 + $0x1] sm:$0x1]   ;;  %v6_v3 = vld [vmem:[#allocation1] sm:$0x1]  }
   0xa   :  { %11 = vrot.lane.b32.xlu0 %v10_v1, %s36_s0  ;;  %23 = vrot.lane.b32.xlu1 %v22_v2, %s37_s8  ;;  %v16_v4 = vld [vmem:[#allocation1 + $0x2] sm:$0x1]   ;;  %8 = vst.msk [vmem:[#allocation0] sm:$0x1] %vm7_vm0, %v6_v3  }
   0xe   :  { %17 = vrot.lane.b32.xlu0 %v16_v4, %s38_s9 }
  0x7c   :  { %v12_v5 = vpop.permute.xlu0 %11   ;;  %v24_v6 = vpop.permute.xlu1 %23  }
  0x7d   :  { %14 = vst.msk [vmem:[#allocation0] sm:$0x1] %vm13_vm1, %v12_v5  }
  0x80   :  { %v18_v7 = vpop.permute.xlu0 %17  }
  0x81   :  { %20 = vst.msk [vmem:[#allocation0] sm:$0x1] %vm19_vm2, %v18_v7  }
  0x82   :  { %26 = vst.msk [vmem:[#allocation0] sm:$0x1] %vm25_vm3, %v24_v6  }
  0x89   :  { %v30_v8 = vld [vmem:[#allocation0] sm:$0x1] }
  0x8a   :  { %32 = vst [vmem:[%s56_s1] sm:$0x1] %v30_v8 }

// kernel: up_conv_forward.3
= control target key start
LH: loop header
LB: loop body
LE: loop exit
PB: predicated region body
PF: predicated region fallthrough
CT: control target
= control target key end

     0   :  { %s512_s12 = smov 0   ;;  %s514_s13 = smov 0   ;;  %s628_s0 = inlined_call_operand.vmem [shape: f32[2,2,128,32], index: 0, kind: input, shape index: {}, may-alias: {0,3}]   ;;  %s629_s1 = inlined_call_operand.vmem [shape: f32[1,32], index: 1, kind: input, shape index: {}]   ;;  %s630_s2 = inlined_call_operand.vmem [shape: f32[1,32], index: 2, kind: input, shape index: {}]   ;;  %s631_s3 = inlined_call_operand.vmem [shape: f32[2,2,128,32], index: 3, kind: output, shape index: {}, may-alias: {0,3}]  }
   0x1   :  { %s516_s14 = smov 0   ;;  %s518_s15 = smov 0  }
   0x2   :  { %s520_s16 = smov 0  }
   0x3 LB: > { %s22_s17 = sadd.s32 1, %s482_s14  ;;  %s25_s18 = sadd.s32 1, %s486_s15  ;;  %s490_s16 = sphi %s520_s16, %s13_s16   ;;  %s486_s15 = sphi %s518_s15, %s635_s15   ;;  %s482_s14 = sphi %s516_s14, %s634_s14   ;;  %s478_s13 = sphi %s514_s13, %s633_s13   ;;  %s474_s12 = sphi %s512_s12, %s632_s12  }
   0x4   : > { %p23_p0 = scmp.ge.s32.totalorder %s22_s17, 2  ;;  %p401_p1 = scmp.ge.s32.totalorder %s490_s16, 1 }
   0x5   : > { %p157_p2 = scmp.lt.s32.totalorder %s490_s16, 5 }
   0x6   : > { %s637_s17 = smov (%p23_p0, %s22_s17), 0  ;;  %s639_s18 = smov (!%p23_p0, %s25_s18), %s486_s15 }
   0x7   : > { %p158_p3 = pnand %p401_p1, %p157_p2  ;;  %p27_p4 = scmp.ge.s32.totalorder %s639_s18, 2 }
   0x8   : > { %p189_p5 = scmp.lt.s32.totalorder (!%p158_p3), %s478_s13, 1  ;;  %p191_p6 = scmp.lt.s32.totalorder (!%p158_p3), %s474_s12, 1  ;;  %v408_v0 = vld [vmem:[%s629_s1] ss:$0 sm:$0xff] (!%p158_p3)  ;;  %vm285_vm0 = vcmask (!%p158_p3), 261120  }
   0x9   : > { %s641_s18 = smov (%p27_p4, %s639_s18), 0  ;;  %161 = sbr.rel (%p158_p3) target bundleno = 40 (0x28), region = 32 }
   0xa   : > { %v409_v1 = vld [vmem:[%s630_s2] ss:$0 sm:$0xff] (!%p158_p3) }
  0x10   : > { %s643_s13 = smov (!%p189_p5, %s478_s13), 1  ;;  %s645_s12 = smov (!%p191_p6, %s474_s12), 1 }
  0x11   : > { %s403_s19 = sshll.u32 %s643_s13, 5  ;;  %s402_s20 = sshll.u32 %s645_s12, 4 }
  0x12   : > { %s542_s21 = sadd.s32 %s403_s19, %s402_s20 }
  0x13   : > { %s404_s22 = sshll.u32 %s542_s21, 3 }
  0x14   : > { %s553_s27 = scalar_lea.vmem %s628_s0, %s404_s22  ;;  %s579_s5 = scalar_lea.vmem %s631_s3, %s404_s22 }
  0x15   : > { %v207_v2 = vld [vmem:[%s553_s27] sm:$0xff]  ;;  %v208_v3 = vld [vmem:[%s553_s27 + $0x8] sm:$0xff]  ;;  %v209_v4 = vld [vmem:[%s553_s27 + $0x10] sm:$0xff] }
  0x16   : > { %v210_v5 = vld [vmem:[%s553_s27 + $0x18] sm:$0xff]  ;;  %v211_v6 = vld [vmem:[%s553_s27 + $0x20] sm:$0xff]  ;;  %v212_v7 = vld [vmem:[%s553_s27 + $0x28] sm:$0xff]  ;;  %v230_v8 = vmul.f32 %v408_v0, %v207_v2  ;;  %v231_v9 = vmul.f32 %v408_v0, %v208_v3  ;;  %v232_v10 = vmul.f32 %v408_v0, %v209_v4 }
  0x17   : > { %v213_v11 = vld [vmem:[%s553_s27 + $0x30] sm:$0xff]  ;;  %v214_v12 = vld [vmem:[%s553_s27 + $0x38] sm:$0xff]  ;;  %v215_v13 = vld [vmem:[%s553_s27 + $0x40] sm:$0xff]  ;;  %v233_v14 = vmul.f32 %v408_v0, %v210_v5  ;;  %v234_v15 = vmul.f32 %v408_v0, %v211_v6  ;;  %v235_v16 = vmul.f32 %v408_v0, %v212_v7 }
  0x18   : > { %v216_v17 = vld [vmem:[%s553_s27 + $0x48] sm:$0xff]  ;;  %v217_v18 = vld [vmem:[%s553_s27 + $0x50] sm:$0xff]  ;;  %v218_v19 = vld [vmem:[%s553_s27 + $0x58] sm:$0xff]  ;;  %v236_v20 = vmul.f32 %v408_v0, %v213_v11  ;;  %v237_v21 = vmul.f32 %v408_v0, %v214_v12  ;;  %v238_v22 = vmul.f32 %v408_v0, %v215_v13  ;;  %v253_v23 = vadd.f32 %v409_v1, %v230_v8 }
  0x19   : > { %v219_v24 = vld [vmem:[%s553_s27 + $0x60] sm:$0xff]  ;;  %v220_v25 = vld [vmem:[%s553_s27 + $0x68] sm:$0xff]  ;;  %v221_v26 = vld [vmem:[%s553_s27 + $0x70] sm:$0xff]  ;;  %v239_v27 = vmul.f32 %v408_v0, %v216_v17  ;;  %v240_v28 = vmul.f32 %v408_v0, %v217_v18  ;;  %v241_v29 = vmul.f32 %v408_v0, %v218_v19  ;;  %v254_v30 = vadd.f32 %v409_v1, %v231_v9 }
  0x1a   : > { %v222_v31 = vld [vmem:[%s553_s27 + $0x78] sm:$0xff]  ;;  %v242_v32 = vmul.f32 %v408_v0, %v219_v24  ;;  %v243_v33 = vmul.f32 %v408_v0, %v220_v25  ;;  %v244_v34 = vmul.f32 %v408_v0, %v221_v26  ;;  %v255_v35 = vadd.f32 %v409_v1, %v232_v10 }
  0x1b   : > { %v245_v36 = vmul.f32 %v408_v0, %v222_v31  ;;  %v256_v37 = vadd.f32 %v409_v1, %v233_v14  ;;  %v257_v38 = vadd.f32 %v409_v1, %v234_v15  ;;  %v258_v39 = vadd.f32 %v409_v1, %v235_v16 }
  0x1c   : > { %v259_v40 = vadd.f32 %v409_v1, %v236_v20  ;;  %v260_v41 = vadd.f32 %v409_v1, %v237_v21  ;;  %v261_v42 = vadd.f32 %v409_v1, %v238_v22  ;;  %v262_v43 = vadd.f32 %v409_v1, %v239_v27 }
  0x1d   : > { %v263_v44 = vadd.f32 %v409_v1, %v240_v28  ;;  %v264_v45 = vadd.f32 %v409_v1, %v241_v29  ;;  %v265_v46 = vadd.f32 %v409_v1, %v242_v32  ;;  %v266_v47 = vadd.f32 %v409_v1, %v243_v33 }
  0x1e   : > { %v267_v48 = vadd.f32 %v409_v1, %v244_v34  ;;  %v268_v49 = vadd.f32 %v409_v1, %v245_v36  ;;  %v269_v50 = vmax.f32 %v253_v23, 0.0  ;;  %v270_v51 = vmax.f32 %v254_v30, 0.0 }
  0x1f   : > { %v271_v52 = vmax.f32 %v255_v35, 0.0  ;;  %v272_v53 = vmax.f32 %v256_v37, 0.0  ;;  %v273_v54 = vmax.f32 %v257_v38, 0.0  ;;  %v274_v55 = vmax.f32 %v258_v39, 0.0 }
  0x20   : > { %v275_v56 = vmax.f32 %v259_v40, 0.0  ;;  %v276_v57 = vmax.f32 %v260_v41, 0.0  ;;  %v277_v58 = vmax.f32 %v261_v42, 0.0  ;;  %v278_v59 = vmax.f32 %v262_v43, 0.0  ;;  %286 = vst.msk [vmem:[%s579_s5] sm:$0xff] %vm285_vm0, %v269_v50  ;;  %287 = vst.msk [vmem:[%s579_s5 + $0x8] sm:$0xff] %vm285_vm0, %v270_v51 }
  0x21   : > { %v279_v60 = vmax.f32 %v263_v44, 0.0  ;;  %v280_v61 = vmax.f32 %v264_v45, 0.0  ;;  %v281_v62 = vmax.f32 %v265_v46, 0.0  ;;  %v282_v63 = vmax.f32 %v266_v47, 0.0  ;;  %288 = vst.msk [vmem:[%s579_s5 + $0x10] sm:$0xff] %vm285_vm0, %v271_v52  ;;  %289 = vst.msk [vmem:[%s579_s5 + $0x18] sm:$0xff] %vm285_vm0, %v272_v53 }
  0x22   : > { %290 = vst.msk [vmem:[%s579_s5 + $0x20] sm:$0xff] %vm285_vm0, %v273_v54  ;;  %291 = vst.msk [vmem:[%s579_s5 + $0x28] sm:$0xff] %vm285_vm0, %v274_v55  ;;  %v283_v0 = vmax.f32 %v267_v48, 0.0  ;;  %v284_v1 = vmax.f32 %v268_v49, 0.0 }
  0x23   : > { %292 = vst.msk [vmem:[%s579_s5 + $0x30] sm:$0xff] %vm285_vm0, %v275_v56  ;;  %293 = vst.msk [vmem:[%s579_s5 + $0x38] sm:$0xff] %vm285_vm0, %v276_v57 }
  0x24   : > { %294 = vst.msk [vmem:[%s579_s5 + $0x40] sm:$0xff] %vm285_vm0, %v277_v58  ;;  %295 = vst.msk [vmem:[%s579_s5 + $0x48] sm:$0xff] %vm285_vm0, %v278_v59 }
  0x25   : > { %296 = vst.msk [vmem:[%s579_s5 + $0x50] sm:$0xff] %vm285_vm0, %v279_v60  ;;  %297 = vst.msk [vmem:[%s579_s5 + $0x58] sm:$0xff] %vm285_vm0, %v280_v61 }
  0x26   : > { %298 = vst.msk [vmem:[%s579_s5 + $0x60] sm:$0xff] %vm285_vm0, %v281_v62  ;;  %299 = vst.msk [vmem:[%s579_s5 + $0x68] sm:$0xff] %vm285_vm0, %v282_v63 }
  0x27   : > { %300 = vst.msk [vmem:[%s579_s5 + $0x70] sm:$0xff] %vm285_vm0, %v283_v0  ;;  %301 = vst.msk [vmem:[%s579_s5 + $0x78] sm:$0xff] %vm285_vm0, %v284_v1 }
  0x28 PF: > { %s13_s16 = sadd.s32 1, %s490_s16   ;;  %s632_s12 = smov %s482_s14 }
  0x29   : > { %p10_p7 = scmp.ge.s32.totalorder %s13_s16, 6   ;;  %s633_s13 = smov %s486_s15 }
  0x2a   : > { %s634_s14 = smov %s637_s17  ;;  %s635_s15 = smov %s641_s18 }
  0x2b   :  { %12 = sbr.rel (!%p10_p7) target bundleno = 3 (0x3), region = 62 }

// kernel: up_conv_forward.2
= control target key start
LH: loop header
LB: loop body
LE: loop exit
PB: predicated region body
PF: predicated region fallthrough
CT: control target
= control target key end

     0   :  { %s1582_s12 = smov 0   ;;  %s1584_s13 = smov 0   ;;  %s2267_s0 = inlined_call_operand.vmem [shape: f32[2,2,10,18,4], index: 0, kind: input, shape index: {}]   ;;  %s2268_s1 = inlined_call_operand.vmem [shape: f32[36,32], index: 1, kind: input, shape index: {}]   ;;  %s2269_s2 = inlined_call_operand.vmem [shape: f32[2,2,128,32], index: 2, kind: output, shape index: {0}]   ;;  %s2270_s3 = inlined_call_operand.vmem [shape: f32[2,2,2,32], index: 3, kind: output, shape index: {1}]  }
   0x1   :  { %s1586_s14 = smov 0   ;;  %s1588_s15 = smov 0  }
   0x2   :  { %s1590_s16 = smov 0  }
   0x3 LB: > { %s23_s17 = sadd.s32 1, %s1544_s14  ;;  %s26_s18 = sadd.s32 1, %s1548_s15  ;;  %s1552_s16 = sphi %s1590_s16, %s14_s16   ;;  %s1548_s15 = sphi %s1588_s15, %s2274_s15   ;;  %s1544_s14 = sphi %s1586_s14, %s2273_s14   ;;  %s1540_s13 = sphi %s1584_s13, %s2272_s13   ;;  %s1536_s12 = sphi %s1582_s12, %s2271_s12  }
   0x4   : > { %p24_p0 = scmp.ge.s32.totalorder %s23_s17, 2  ;;  %p1369_p1 = scmp.ge.s32.totalorder %s1552_s16, 1 }
   0x5   : > { %p162_p2 = scmp.lt.s32.totalorder %s1552_s16, 5 }
   0x6   : > { %s2276_s17 = smov (%p24_p0, %s23_s17), 0  ;;  %s2278_s18 = smov (!%p24_p0, %s26_s18), %s1548_s15 }
   0x7   : > { %p163_p3 = pnand %p1369_p1, %p162_p2  ;;  %p28_p4 = scmp.ge.s32.totalorder %s2278_s18, 2 }
   0x8   : > { %p202_p5 = scmp.lt.s32.totalorder (!%p163_p3), %s1540_s13, 1  ;;  %p204_p6 = scmp.lt.s32.totalorder (!%p163_p3), %s1536_s12, 1  ;;  %vm371_vm0 = vcmask (!%p163_p3), 1045504   ;;  %vm282_vm1 = vcmask (!%p163_p3), 1046528   ;;  %v910_v28 = vld [vmem:[%s2268_s1] sm:$0xff] (!%p163_p3)  ;;  %v911_v29 = vld [vmem:[%s2268_s1 + $0x8] sm:$0xff] (!%p163_p3) }
   0x9   : > { %s2280_s18 = smov (%p28_p4, %s2278_s18), 0  ;;  %166 = sbr.rel (%p163_p3) target bundleno = 627 (0x273), region = 28 }
   0xa   : > { %s1554_s26 = smov (!%p163_p3), 12   ;;  %s1555_s27 = smov (!%p163_p3), 8   ;;  %v1450_v30 = vpack.c.bf16 (!%p163_p3), %v911_v29, %v910_v28  ;;  %v912_v33 = vld [vmem:[%s2268_s1 + $0x10] sm:$0xff] (!%p163_p3)  ;;  %v913_v34 = vld [vmem:[%s2268_s1 + $0x18] sm:$0xff] (!%p163_p3)  ;;  %v914_v38 = vld [vmem:[%s2268_s1 + $0x20] sm:$0xf] (!%p163_p3) }
   0xb   : > { %s1556_s28 = smov (!%p163_p3), 4   ;;  %s1557_s29 = smov (!%p163_p3), 16   ;;  %v1454_v36 = vpack.c.bf16 (!%p163_p3), %v913_v34, %v912_v33  ;;  %vm964_vm2 = vcmask (!%p163_p3), 1043456   ;;  %vm774_vm3 = vcmask (!%p163_p3), 31744   ;;  %vm791_vm4 = vcmask (!%p163_p3), 64512  }
   0xc   : > { %s1558_s30 = smov (!%p163_p3), 20   ;;  %s1559_s8 = smov (!%p163_p3), 24   ;;  %1451 = vmatprep.subr.bf16.mxu0 (!%p163_p3), %v1450_v30  ;;  %1458 = vmatprep.subr.bf16.mxu1 (!%p163_p3), %v1450_v30  ;;  %vm808_vm5 = vcmask (!%p163_p3), 97280   ;;  %vm825_vm6 = vcmask (!%p163_p3), 130048   ;;  %vm842_vm7 = vcmask (!%p163_p3), 162816   ;;  %vm859_vm8 = vcmask (!%p163_p3), 195584  }
   0xd   : > { %1453 = vmatpush3.bf16.msra.mxu0 (!%p163_p3), %v1450_v30  ;;  %1461 = vmatpush3.bf16.msra.mxu1 (!%p163_p3), %v1450_v30  ;;  %s1561_s23 = smov (!%p163_p3), 32   ;;  %vm876_vm9 = vcmask (!%p163_p3), 228352   ;;  %vm893_vm10 = vcmask (!%p163_p3), 261120   ;;  %vm915_vm11 = vcmask (!%p163_p3), 293888   ;;  %vm1203_vm12 = vcmask (!%p163_p3), 1040384  }
   0xe   : > { %1455 = vmatprep.subr.bf16.mxu0 (!%p163_p3), %v1454_v36  ;;  %1459 = vmatprep.subr.bf16.mxu1 (!%p163_p3), %v1454_v36  ;;  %vm1205_vm13 = vcmask (!%p163_p3), 254976  }
  0x10   : > { %s2282_s13 = smov (!%p202_p5, %s1540_s13), 1  ;;  %s2284_s12 = smov (!%p204_p6, %s1536_s12), 1 }
  0x11   : > { %s1465_s19 = smul.u32 60, %s2282_s13  ;;  %1457 = vmatpush3.bf16.msra.mxu0 %v1454_v36  ;;  %1462 = vmatpush3.bf16.msra.mxu1 %v1454_v36  ;;  %s1371_s24 = sshll.u32 %s2284_s12, 4 }
  0x12   : > { %s1464_s20 = smul.u32 30, %s2284_s12  ;;  %1424 = vmatprep.subr.msk.mxu0 %vm964_vm2, %v914_v38  ;;  %1460 = vmatprep.subr.msk.mxu1 %vm964_vm2, %v914_v38  ;;  %s1374_s4 = sshll.u32 %s2282_s13, 1 }
  0x13   : > { %s225_s5 = sadd.s32 %s1374_s4, %s2284_s12 }
  0x14   : > { %s208_s21 = sadd.s32 %s1465_s19, %s1464_s20  ;;  %s1560_s20 = smov 28  }
  0x15   : > { %s1370_s22 = sshll.u32 %s208_s21, 3  ;;  %1425 = vmatpush3.msk.msra.mxu0 %vm964_vm2, %v914_v38  ;;  %1463 = vmatpush3.msk.msra.mxu1 %vm964_vm2, %v914_v38  ;;  %s1375_s6 = sshll.u32 %s225_s5, 1 }
  0x16   : > { %s1621_s25 = scalar_lea.vmem %s2267_s0, %s1370_s22  ;;  %s227_s9 = scalar_lea.vmem %s2270_s3, %s1375_s6 }
  0x17   : > { %v1624_v0 = vld [vmem:[%s1621_s25 + $0x20] sm:$0xff]  ;;  %v1627_v1 = vld [vmem:[%s1621_s25 + $0x18] sm:$0xff]  ;;  %v1637_v3 = vld [vmem:[%s1621_s25 + $0x8] sm:$0xff] }
  0x18   : > { %v1630_v2 = vld [vmem:[%s1621_s25] sm:$0xff]  ;;  %464 = vrot.lane.b32.xlu1 %v1624_v0, %s1554_s26  ;;  %462 = vrot.lane.b32.xlu0 %v1627_v1, %s1554_s26  ;;  %v230_v6 = vld [vmem:[%s1621_s25 + $0x10] sm:$0x3]  ;;  %v373_v7 = vrot.slane %v1637_v3, 2  ;;  %v284_v8 = vrot.slane %v1637_v3, 1  ;;  %v288_v15 = vrot.slane %v1627_v1, 1 }
  0x19   : > { %v372_v4 = vrot.slane %v1630_v2, 2  ;;  %v283_v5 = vrot.slane %v1630_v2, 1  ;;  %v375_v9 = vrot.slane %v230_v6, 2  ;;  %v286_v10 = vrot.slane %v230_v6, 1  ;;  %v233_v17 = vld [vmem:[%s1621_s25 + $0x28] sm:$0x3] }
  0x1a   : > { %v289_v16 = vrot.slane %v1624_v0, 1  ;;  %v377_v19 = vrot.slane %v1627_v1, 2  ;;  %v378_v20 = vrot.slane %v1624_v0, 2  ;;  %v291_v21 = vrot.slane %v233_v17, 1  ;;  %v1667_v25 = vld [vmem:[%s1621_s25 + $0x30] sm:$0xff]  ;;  %v1671_v27 = vld [vmem:[%s1621_s25 + $0x38] sm:$0xff] }
  0x1b   : > { %v374_v11 = vsel %vm371_vm0, %v372_v4, %v373_v7  ;;  %v285_v12 = vsel %vm282_vm1, %v283_v5, %v284_v8  ;;  %v376_v13 = vsel %vm371_vm0, %v373_v7, %v375_v9  ;;  %v287_v14 = vsel %vm282_vm1, %v284_v8, %v286_v10  ;;  %v236_v37 = vld [vmem:[%s1621_s25 + $0x40] sm:$0x3]  ;;  %v1718_v46 = vld [vmem:[%s1621_s25 + $0x48] sm:$0xff]  ;;  %v1721_v47 = vld [vmem:[%s1621_s25 + $0x50] sm:$0xff] }
  0x1c   : > { %412 = vrot.lane.b32.xlu1 %v374_v11, %s1555_s27  ;;  %323 = vrot.lane.b32.xlu0 %v285_v12, %s1556_s28  ;;  %v290_v18 = vsel %vm282_vm1, %v288_v15, %v289_v16  ;;  %v379_v22 = vsel %vm371_vm0, %v377_v19, %v378_v20  ;;  %v292_v23 = vsel %vm282_vm1, %v289_v16, %v291_v21  ;;  %v380_v24 = vrot.slane %v233_v17, 2  ;;  %v239_v51 = vld [vmem:[%s1621_s25 + $0x58] sm:$0x3]  ;;  %v1753_v59 = vld [vmem:[%s1621_s25 + $0x60] sm:$0xff] }
  0x1d   : > { %v293_v31 = vrot.slane %v1667_v25, 1  ;;  %v294_v32 = vrot.slane %v1671_v27, 1  ;;  %v382_v39 = vrot.slane %v1667_v25, 2  ;;  %v383_v40 = vrot.slane %v1671_v27, 2  ;;  %v1756_v60 = vld [vmem:[%s1621_s25 + $0x68] sm:$0xff]  ;;  %v1793_v17 = vld [vmem:[%s1621_s25 + $0x80] sm:$0xff] }
  0x1e   : > { %v381_v26 = vsel %vm371_vm0, %v378_v20, %v380_v24  ;;  %v296_v41 = vrot.slane %v236_v37, 1  ;;  %v385_v44 = vrot.slane %v236_v37, 2  ;;  %v298_v48 = vrot.slane %v1718_v46, 1  ;;  %v242_v4 = vld [vmem:[%s1621_s25 + $0x70] sm:$0x3] }
  0x1f   : > { %v295_v35 = vsel %vm282_vm1, %v293_v31, %v294_v32  ;;  %v384_v42 = vsel %vm371_vm0, %v382_v39, %v383_v40  ;;  %v299_v49 = vrot.slane %v1721_v47, 1  ;;  %v387_v52 = vrot.slane %v1718_v46, 2 }
  0x20   : > { %414 = vrot.lane.b32.xlu1 %v376_v13, %s1555_s27  ;;  %325 = vrot.lane.b32.xlu0 %v287_v14, %s1556_s28  ;;  %v297_v43 = vsel %vm282_vm1, %v294_v32, %v296_v41  ;;  %v386_v45 = vsel %vm371_vm0, %v383_v40, %v385_v44  ;;  %v388_v53 = vrot.slane %v1721_v47, 2  ;;  %v301_v54 = vrot.slane %v239_v51, 1  ;;  %v1790_v14 = vld [vmem:[%s1621_s25 + $0x78] sm:$0xff] }
  0x21   : > { %v300_v50 = vsel %vm282_vm1, %v298_v48, %v299_v49  ;;  %v390_v57 = vrot.slane %v239_v51, 2  ;;  %v303_v61 = vrot.slane %v1753_v59, 1  ;;  %v304_v62 = vrot.slane %v1756_v60, 1 }
  0x22   : > { %v389_v55 = vsel %vm371_vm0, %v387_v52, %v388_v53  ;;  %v302_v56 = vsel %vm282_vm1, %v299_v49, %v301_v54  ;;  %v392_v5 = vrot.slane %v1753_v59, 2  ;;  %v393_v6 = vrot.slane %v1756_v60, 2  ;;  %v1840_v49 = vld [vmem:[%s1621_s25 + $0x90] sm:$0xff]  ;;  %v1848_v52 = vld [vmem:[%s1621_s25 + $0x98] sm:$0xff] }
  0x23   : > { %v391_v58 = vsel %vm371_vm0, %v388_v53, %v390_v57  ;;  %v305_v63 = vsel %vm282_vm1, %v303_v61, %v304_v62  ;;  %v306_v7 = vrot.slane %v242_v4, 1  ;;  %v395_v10 = vrot.slane %v242_v4, 2 }
  0x24   : > { %327 = vrot.lane.b32.xlu1 %v290_v18, %s1556_s28  ;;  %516 = vrot.lane.b32.xlu0 %v290_v18, %s1557_s29  ;;  %v394_v8 = vsel %vm371_vm0, %v392_v5, %v393_v6  ;;  %v308_v18 = vrot.slane %v1790_v14, 1  ;;  %v309_v19 = vrot.slane %v1793_v17, 1  ;;  %v397_v28 = vrot.slane %v1790_v14, 2 }
  0x25   : > { %v307_v9 = vsel %vm282_vm1, %v304_v62, %v306_v7  ;;  %v396_v11 = vsel %vm371_vm0, %v393_v6, %v395_v10  ;;  %v398_v29 = vrot.slane %v1793_v17, 2  ;;  %v313_v57 = vrot.slane %v1840_v49, 1 }
  0x27   : > { %v399_v33 = vsel %vm371_vm0, %v397_v28, %v398_v29 }
  0x28   : > { %569 = vrot.lane.b32.xlu1 %v379_v22, %s1558_s30  ;;  %518 = vrot.lane.b32.xlu0 %v292_v23, %s1557_s29 }
  0x2c   : > { %416 = vrot.lane.b32.xlu1 %v379_v22, %s1555_s27  ;;  %329 = vrot.lane.b32.xlu0 %v292_v23, %s1556_s28  ;;  %v310_v22 = vsel %vm282_vm1, %v308_v18, %v309_v19 }
  0x30   : > { %619 = vrot.lane.b32.xlu1 %v1667_v25, %s1559_s8  ;;  %571 = vrot.lane.b32.xlu0 %v381_v26, %s1558_s30 }
  0x34   : > { %466 = vrot.lane.b32.xlu1 %v1667_v25, %s1554_s26  ;;  %418 = vrot.lane.b32.xlu0 %v381_v26, %s1555_s27  ;;  %v245_v26 = vld [vmem:[%s1621_s25 + $0x88] sm:$0x3] }
  0x35   : > { %v311_v30 = vrot.slane %v245_v26, 1  ;;  %v400_v37 = vrot.slane %v245_v26, 2 }
  0x37   : > { %v312_v34 = vsel %vm282_vm1, %v309_v19, %v311_v30  ;;  %v401_v40 = vsel %vm371_vm0, %v398_v29, %v400_v37 }
  0x38   : > { %673 = vrot.lane.b32.xlu1 %v295_v35, %s1560_s20  ;;  %621 = vrot.lane.b32.xlu0 %v1671_v27, %s1559_s8 }
  0x3c   : > { %520 = vrot.lane.b32.xlu1 %v295_v35, %s1557_s29  ;;  %468 = vrot.lane.b32.xlu0 %v1671_v27, %s1554_s26 }
  0x40   : > { %726 = vrot.lane.b32.xlu1 %v384_v42, %s1561_s23  ;;  %675 = vrot.lane.b32.xlu0 %v297_v43, %s1560_s20 }
  0x44   : > { %522 = vrot.lane.b32.xlu1 %v297_v43, %s1557_s29  ;;  %331 = vrot.lane.b32.xlu0 %v295_v35, %s1556_s28 }
  0x48   : > { %728 = vrot.lane.b32.xlu1 %v386_v45, %s1561_s23  ;;  %573 = vrot.lane.b32.xlu0 %v384_v42, %s1558_s30 }
  0x4c   : > { %420 = vrot.lane.b32.xlu1 %v384_v42, %s1555_s27  ;;  %333 = vrot.lane.b32.xlu0 %v297_v43, %s1556_s28 }
  0x50   : > { %623 = vrot.lane.b32.xlu1 %v1718_v46, %s1559_s8  ;;  %575 = vrot.lane.b32.xlu0 %v386_v45, %s1558_s30 }
  0x54   : > { %470 = vrot.lane.b32.xlu1 %v1718_v46, %s1554_s26  ;;  %422 = vrot.lane.b32.xlu0 %v386_v45, %s1555_s27 }
  0x58   : > { %677 = vrot.lane.b32.xlu1 %v300_v50, %s1560_s20  ;;  %625 = vrot.lane.b32.xlu0 %v1721_v47, %s1559_s8 }
  0x5c   : > { %524 = vrot.lane.b32.xlu1 %v300_v50, %s1557_s29  ;;  %472 = vrot.lane.b32.xlu0 %v1721_v47, %s1554_s26 }
  0x60   : > { %730 = vrot.lane.b32.xlu1 %v389_v55, %s1561_s23  ;;  %679 = vrot.lane.b32.xlu0 %v302_v56, %s1560_s20 }
  0x64   : > { %526 = vrot.lane.b32.xlu1 %v302_v56, %s1557_s29  ;;  %335 = vrot.lane.b32.xlu0 %v300_v50, %s1556_s28 }
  0x68   : > { %732 = vrot.lane.b32.xlu1 %v391_v58, %s1561_s23  ;;  %577 = vrot.lane.b32.xlu0 %v389_v55, %s1558_s30 }
  0x6c   : > { %424 = vrot.lane.b32.xlu1 %v389_v55, %s1555_s27  ;;  %337 = vrot.lane.b32.xlu0 %v302_v56, %s1556_s28 }
  0x70   : > { %627 = vrot.lane.b32.xlu1 %v1753_v59, %s1559_s8  ;;  %579 = vrot.lane.b32.xlu0 %v391_v58, %s1558_s30 }
  0x74   : > { %474 = vrot.lane.b32.xlu1 %v1753_v59, %s1554_s26  ;;  %426 = vrot.lane.b32.xlu0 %v391_v58, %s1555_s27  ;;  %v314_v58 = vrot.slane %v1848_v52, 1 }
  0x76   : > { %v315_v5 = vsel %vm282_vm1, %v313_v57, %v314_v58 }
  0x78   : > { %681 = vrot.lane.b32.xlu1 %v305_v63, %s1560_s20  ;;  %629 = vrot.lane.b32.xlu0 %v1756_v60, %s1559_s8 }
  0x7c   : > { %528 = vrot.lane.b32.xlu1 %v305_v63, %s1557_s29  ;;  %476 = vrot.lane.b32.xlu0 %v1756_v60, %s1554_s26 }
  0x80   : > { %734 = vrot.lane.b32.xlu1 %v394_v8, %s1561_s23  ;;  %683 = vrot.lane.b32.xlu0 %v307_v9, %s1560_s20 }
  0x84   : > { %530 = vrot.lane.b32.xlu1 %v307_v9, %s1557_s29  ;;  %339 = vrot.lane.b32.xlu0 %v305_v63, %s1556_s28 }
  0x88   : > { %736 = vrot.lane.b32.xlu1 %v396_v11, %s1561_s23  ;;  %581 = vrot.lane.b32.xlu0 %v394_v8, %s1558_s30 }
  0x8a   : > { %v1785_v12 = vpop.permute.xlu1 %464  ;;  %v463_v13 = vpop.permute.xlu0 %462 }
  0x8c   : > { %428 = vrot.lane.b32.xlu1 %v394_v8, %s1555_s27  ;;  %341 = vrot.lane.b32.xlu0 %v307_v9, %s1556_s28  ;;  %v248_v9 = vld [vmem:[%s1621_s25 + $0xa0] sm:$0x3] }
  0x8d   : > { %v405_v29 = vrot.slane %v248_v9, 2 }
  0x8e   : > { %v413_v15 = vpop.permute.xlu1 %412  ;;  %v324_v16 = vpop.permute.xlu0 %323 }
  0x8f   : > { %v775_v43 = vsel %vm774_vm3, %v1630_v2, %v324_v16  ;;  %v316_v16 = vrot.slane %v248_v9, 1 }
  0x90   : > { %631 = vrot.lane.b32.xlu1 %v1790_v14, %s1559_s8  ;;  %583 = vrot.lane.b32.xlu0 %v396_v11, %s1558_s30  ;;  %v792_v48 = vsel %vm791_vm4, %v775_v43, %v413_v15  ;;  %v402_v15 = vrot.slane %v1840_v49, 2  ;;  %v1915_v43 = vld [vmem:[%s1621_s25 + $0xa8] sm:$0xff] }
  0x91   : > { %v809_v2 = vsel %vm808_vm5, %v792_v48, %v463_v13 }
  0x92   : > { %v1800_v20 = vpop.permute.xlu1 %414  ;;  %v326_v21 = vpop.permute.xlu0 %325 }
  0x93   : > { %v776_v54 = vsel %vm774_vm3, %v1637_v3, %v326_v21 }
  0x94   : > { %478 = vrot.lane.b32.xlu1 %v1790_v14, %s1554_s26  ;;  %430 = vrot.lane.b32.xlu0 %v396_v11, %s1555_s27  ;;  %v793_v3 = vsel %vm791_vm4, %v776_v54, %v1800_v20 }
  0x95   : > { %v810_v6 = vsel %vm808_vm5, %v793_v3, %v1785_v12  ;;  %v403_v12 = vrot.slane %v1848_v52, 2 }
  0x96   : > { %v1806_v23 = vpop.permute.xlu1 %327  ;;  %v517_v24 = vpop.permute.xlu0 %516 }
  0x97   : > { %v826_v53 = vsel %vm825_vm6, %v809_v2, %v517_v24  ;;  %v317_v24 = vsel %vm282_vm1, %v314_v58, %v316_v16  ;;  %v1924_v2 = vld [vmem:[%s1621_s25 + $0xb0] sm:$0xff] }
  0x98   : > { %685 = vrot.lane.b32.xlu1 %v310_v22, %s1560_s20  ;;  %633 = vrot.lane.b32.xlu0 %v1793_v17, %s1559_s8 }
  0x9a   : > { %v570_v31 = vpop.permute.xlu1 %569  ;;  %v519_v32 = vpop.permute.xlu0 %518 }
  0x9b   : > { %v843_v55 = vsel %vm842_vm7, %v826_v53, %v570_v31  ;;  %v827_v10 = vsel %vm825_vm6, %v810_v6, %v519_v32  ;;  %v406_v32 = vsel %vm371_vm0, %v403_v12, %v405_v29  ;;  %v319_v53 = vrot.slane %v1924_v2, 1 }
  0x9c   : > { %532 = vrot.lane.b32.xlu1 %v310_v22, %s1557_s29  ;;  %480 = vrot.lane.b32.xlu0 %v1793_v17, %s1554_s26 }
  0x9e   : > { %v1819_v35 = vpop.permute.xlu1 %416  ;;  %v1821_v36 = vpop.permute.xlu0 %329 }
  0x9f   : > { %v778_v57 = vsel %vm774_vm3, %v1624_v0, %v1821_v36  ;;  %v251_v0 = vld [vmem:[%s1621_s25 + $0xb8] sm:$0x3] }
  0xa0   : > { %738 = vrot.lane.b32.xlu1 %v399_v33, %s1561_s23  ;;  %687 = vrot.lane.b32.xlu0 %v312_v34, %s1560_s20  ;;  %v321_v6 = vrot.slane %v251_v0, 1 }
  0xa2   : > { %v620_v38 = vpop.permute.xlu1 %619  ;;  %v572_v39 = vpop.permute.xlu0 %571 }
  0xa3   : > { %v860_v56 = vsel %vm859_vm8, %v843_v55, %v620_v38  ;;  %v844_v11 = vsel %vm842_vm7, %v827_v10, %v572_v39  ;;  %v777_v39 = vsel %vm774_vm3, %v1627_v1, %v1806_v23 }
  0xa4   : > { %534 = vrot.lane.b32.xlu1 %v312_v34, %s1557_s29  ;;  %343 = vrot.lane.b32.xlu0 %v310_v22, %s1556_s28  ;;  %v404_v22 = vsel %vm371_vm0, %v402_v15, %v403_v12  ;;  %v322_v15 = vsel %vm282_vm1, %v319_v53, %v321_v6 }
  0xa6   : > { %v1828_v41 = vpop.permute.xlu1 %466  ;;  %v1830_v42 = vpop.permute.xlu0 %418 }
  0xa7   : > { %v795_v58 = vsel %vm791_vm4, %v778_v57, %v1830_v42 }
  0xa8   : > { %740 = vrot.lane.b32.xlu1 %v401_v40, %s1561_s23  ;;  %585 = vrot.lane.b32.xlu0 %v399_v33, %s1558_s30 }
  0xaa   : > { %v674_v44 = vpop.permute.xlu1 %673  ;;  %v622_v45 = vpop.permute.xlu0 %621 }
  0xab   : > { %v877_v61 = vsel %vm876_vm9, %v860_v56, %v674_v44  ;;  %v861_v13 = vsel %vm859_vm8, %v844_v11, %v622_v45 }
  0xac   : > { %432 = vrot.lane.b32.xlu1 %v399_v33, %s1555_s27  ;;  %345 = vrot.lane.b32.xlu0 %v312_v34, %s1556_s28 }
  0xae   : > { %v1843_v50 = vpop.permute.xlu1 %520  ;;  %v1845_v51 = vpop.permute.xlu0 %468 }
  0xb0   : > { %635 = vrot.lane.b32.xlu1 %v1840_v49, %s1559_s8  ;;  %587 = vrot.lane.b32.xlu0 %v401_v40, %s1558_s30 }
  0xb2   : > { %v727_v62 = vpop.permute.xlu1 %726  ;;  %v676_v63 = vpop.permute.xlu0 %675 }
  0xb3   : > { %v894_v4 = vsel %vm893_vm10, %v877_v61, %v727_v62  ;;  %v878_v18 = vsel %vm876_vm9, %v861_v13, %v676_v63  ;;  %v812_v62 = vsel %vm808_vm5, %v795_v58, %v1845_v51  ;;  %v408_v51 = vrot.slane %v1924_v2, 2  ;;  %v254_v58 = vld [vmem:[%s1621_s25 + $0xd0] sm:$0x3] }
  0xb4   : > { %482 = vrot.lane.b32.xlu1 %v1840_v49, %s1554_s26  ;;  %434 = vrot.lane.b32.xlu0 %v401_v40, %s1555_s27  ;;  %v794_v40 = vsel %vm791_vm4, %v777_v39, %v1819_v35 }
  0xb5   : > { %1426 = vmatprep.mubr.msk.f32.mxu0 %vm915_vm11, %v894_v4  ;;  %v811_v44 = vsel %vm808_vm5, %v794_v40, %v1828_v41  ;;  %v318_v41 = vrot.slane %v1915_v43, 1 }
  0xb6   : > { %v1871_v7 = vpop.permute.xlu1 %522  ;;  %v1873_v8 = vpop.permute.xlu0 %331  ;;  %v828_v1 = vsel %vm825_vm6, %v811_v44, %v1843_v50  ;;  %v253_v44 = vld [vmem:[%s1621_s25 + $0xc8] sm:$0xff] }
  0xb7   : > { %v320_v61 = vsel %vm282_vm1, %v318_v41, %v319_v53  ;;  %v829_v36 = vsel %vm825_vm6, %v812_v62, %v1871_v7  ;;  %v565_v62 = vrot.slane %v253_v44, 2 }
  0xb8   : > { %689 = vrot.lane.b32.xlu1 %v315_v5, %s1560_s20  ;;  %637 = vrot.lane.b32.xlu0 %v1848_v52, %s1559_s8 }
  0xba   : > { %v729_v19 = vpop.permute.xlu1 %728  ;;  %v574_v20 = vpop.permute.xlu0 %573 }
  0xbb   : > { %v895_v21 = vsel %vm893_vm10, %v878_v18, %v729_v19  ;;  %v845_v23 = vsel %vm842_vm7, %v828_v1, %v574_v20  ;;  %v410_v18 = vrot.slane %v251_v0, 2  ;;  %v514_v0 = vrot.slane %v254_v58, 1 }
  0xbc   : > { %536 = vrot.lane.b32.xlu1 %v315_v5, %s1557_s29  ;;  %484 = vrot.lane.b32.xlu0 %v1848_v52, %s1554_s26 }
  0xbd   : > { %1427 = vmatmul.mubr.msk.f32.vlgmr.msra.gmra.mrb[0].mxu0 %vm915_vm11, %v895_v21  ;;  %v411_v21 = vsel %vm371_vm0, %v408_v51, %v410_v18  ;;  %v256_v18 = vld [vmem:[%s1621_s25 + $0xe0] sm:$0xff] }
  0xbe   : > { %v1892_v26 = vpop.permute.xlu1 %420  ;;  %v1894_v28 = vpop.permute.xlu0 %333 }
  0xc0   : > { %742 = vrot.lane.b32.xlu1 %v404_v22, %s1561_s23  ;;  %691 = vrot.lane.b32.xlu0 %v317_v24, %s1560_s20 }
  0xc2   : > { %v624_v30 = vpop.permute.xlu1 %623  ;;  %v576_v31 = vpop.permute.xlu0 %575 }
  0xc3   : > { %v862_v35 = vsel %vm859_vm8, %v845_v23, %v624_v30  ;;  %v846_v4 = vsel %vm842_vm7, %v829_v36, %v576_v31  ;;  %v779_v31 = vsel %vm774_vm3, %v1667_v25, %v1873_v8  ;;  %v512_v23 = vrot.slane %v253_v44, 1 }
  0xc4   : > { %538 = vrot.lane.b32.xlu1 %v317_v24, %s1557_s29  ;;  %347 = vrot.lane.b32.xlu0 %v315_v5, %s1556_s28  ;;  %v407_v5 = vrot.slane %v1915_v43, 2 }
  0xc6   : > { %v1901_v33 = vpop.permute.xlu1 %470  ;;  %v1903_v34 = vpop.permute.xlu0 %422  ;;  %v409_v13 = vsel %vm371_vm0, %v407_v5, %v408_v51  ;;  %v515_v5 = vsel %vm282_vm1, %v512_v23, %v514_v0 }
  0xc8   : > { %744 = vrot.lane.b32.xlu1 %v406_v32, %s1561_s23  ;;  %589 = vrot.lane.b32.xlu0 %v404_v22, %s1558_s30 }
  0xca   : > { %v678_v37 = vpop.permute.xlu1 %677  ;;  %v626_v38 = vpop.permute.xlu0 %625 }
  0xcb   : > { %v879_v54 = vsel %vm876_vm9, %v862_v35, %v678_v37  ;;  %v863_v42 = vsel %vm859_vm8, %v846_v4, %v626_v38  ;;  %v252_v37 = vld [vmem:[%s1621_s25 + $0xc0] sm:$0xff] }
  0xcc   : > { %436 = vrot.lane.b32.xlu1 %v404_v22, %s1555_s27  ;;  %349 = vrot.lane.b32.xlu0 %v317_v24, %s1556_s28 }
  0xce   : > { %v1919_v45 = vpop.permute.xlu1 %524  ;;  %v1921_v48 = vpop.permute.xlu0 %472 }
  0xd0   : > { %639 = vrot.lane.b32.xlu1 %v1915_v43, %s1559_s8  ;;  %591 = vrot.lane.b32.xlu0 %v406_v32, %s1558_s30 }
  0xd2   : > { %v731_v55 = vpop.permute.xlu1 %730  ;;  %v680_v56 = vpop.permute.xlu0 %679 }
  0xd3   : > { %v896_v50 = vsel %vm893_vm10, %v879_v54, %v731_v55  ;;  %v880_v9 = vsel %vm876_vm9, %v863_v42, %v680_v56 }
  0xd4   : > { %486 = vrot.lane.b32.xlu1 %v1915_v43, %s1554_s26  ;;  %438 = vrot.lane.b32.xlu0 %v406_v32, %s1555_s27  ;;  %v796_v32 = vsel %vm791_vm4, %v779_v31, %v1892_v26  ;;  %v511_v26 = vrot.slane %v252_v37, 1 }
  0xd5   : > { %1429 = vmatprep.mubr.msk.f32.mxu0 %vm915_vm11, %v896_v50  ;;  %v813_v38 = vsel %vm808_vm5, %v796_v32, %v1901_v33 }
  0xd6   : > { %v1949_v63 = vpop.permute.xlu1 %526  ;;  %v1951_v3 = vpop.permute.xlu0 %335  ;;  %v830_v1 = vsel %vm825_vm6, %v813_v38, %v1919_v45  ;;  %v780_v45 = vsel %vm774_vm3, %v1671_v27, %v1894_v28  ;;  %v513_v55 = vsel %vm282_vm1, %v511_v26, %v512_v23  ;;  %v722_v38 = vrot.slane %v256_v18, 2 }
  0xd7   : > { %v797_v54 = vsel %vm791_vm4, %v780_v45, %v1903_v34 }
  0xd8   : > { %693 = vrot.lane.b32.xlu1 %v320_v61, %s1560_s20  ;;  %641 = vrot.lane.b32.xlu0 %v1924_v2, %s1559_s8  ;;  %v814_v56 = vsel %vm808_vm5, %v797_v54, %v1921_v48 }
  0xd9   : > { %v831_v27 = vsel %vm825_vm6, %v814_v56, %v1949_v63 }
  0xda   : > { %v733_v10 = vpop.permute.xlu1 %732  ;;  %v578_v11 = vpop.permute.xlu0 %577 }
  0xdb   : > { %v897_v7 = vsel %vm893_vm10, %v880_v9, %v733_v10  ;;  %v847_v25 = vsel %vm842_vm7, %v830_v1, %v578_v11  ;;  %v567_v9 = vrot.slane %v254_v58, 2 }
  0xdc   : > { %540 = vrot.lane.b32.xlu1 %v320_v61, %s1557_s29  ;;  %488 = vrot.lane.b32.xlu0 %v1924_v2, %s1554_s26 }
  0xdd   : > { %1430 = vmatmul.mubr.msk.f32.gmra.mrb[2].mxu0 %vm915_vm11, %v897_v7  ;;  %v568_v7 = vsel %vm371_vm0, %v565_v62, %v567_v9 }
  0xde   : > { %v1971_v12 = vpop.permute.xlu1 %424  ;;  %v1973_v16 = vpop.permute.xlu0 %337 }
  0xe0   : > { %746 = vrot.lane.b32.xlu1 %v409_v13, %s1561_s23  ;;  %695 = vrot.lane.b32.xlu0 %v322_v15, %s1560_s20 }
  0xe2   : > { %v628_v19 = vpop.permute.xlu1 %627  ;;  %v580_v20 = vpop.permute.xlu0 %579 }
  0xe3   : > { %v864_v8 = vsel %vm859_vm8, %v847_v25, %v628_v19  ;;  %v848_v28 = vsel %vm842_vm7, %v831_v27, %v580_v20  ;;  %v255_v19 = vld [vmem:[%s1621_s25 + $0xd8] sm:$0xff]  ;;  %v257_v20 = vld [vmem:[%s1621_s25 + $0xe8] sm:$0x3]  ;;  %s1372_s25 = sshll.u32 %s2282_s13, 5 }
  0xe4   : > { %542 = vrot.lane.b32.xlu1 %v322_v15, %s1557_s29  ;;  %351 = vrot.lane.b32.xlu0 %v320_v61, %s1556_s28  ;;  %v564_v61 = vrot.slane %v252_v37, 2  ;;  %v724_v26 = vrot.slane %v257_v20, 2 }
  0xe6   : > { %v1980_v22 = vpop.permute.xlu1 %474  ;;  %v1982_v24 = vpop.permute.xlu0 %426  ;;  %v566_v63 = vsel %vm371_vm0, %v564_v61, %v565_v62 }
  0xe8   : > { %748 = vrot.lane.b32.xlu1 %v411_v21, %s1561_s23  ;;  %593 = vrot.lane.b32.xlu0 %v409_v13, %s1558_s30 }
  0xea   : > { %v682_v29 = vpop.permute.xlu1 %681  ;;  %v630_v30 = vpop.permute.xlu0 %629 }
  0xeb   : > { %v881_v33 = vsel %vm876_vm9, %v864_v8, %v682_v29  ;;  %v865_v34 = vsel %vm859_vm8, %v848_v28, %v630_v30  ;;  %v668_v29 = vrot.slane %v255_v19, 1  ;;  %v671_v30 = vrot.slane %v257_v20, 1 }
  0xec   : > { %440 = vrot.lane.b32.xlu1 %v409_v13, %s1555_s27  ;;  %353 = vrot.lane.b32.xlu0 %v322_v15, %s1556_s28 }
  0xee   : > { %v1996_v39 = vpop.permute.xlu1 %528  ;;  %v1998_v40 = vpop.permute.xlu0 %476 }
  0xf0   : > { %643 = vrot.lane.b32.xlu1 %v252_v37, %s1559_s8  ;;  %595 = vrot.lane.b32.xlu0 %v411_v21, %s1558_s30 }
  0xf2   : > { %v735_v35 = vpop.permute.xlu1 %734  ;;  %v684_v41 = vpop.permute.xlu0 %683 }
  0xf3   : > { %v898_v53 = vsel %vm893_vm10, %v881_v33, %v735_v35  ;;  %v882_v48 = vsel %vm876_vm9, %v865_v34, %v684_v41  ;;  %v725_v41 = vsel %vm371_vm0, %v722_v38, %v724_v26 }
  0xf4   : > { %490 = vrot.lane.b32.xlu1 %v252_v37, %s1554_s26  ;;  %442 = vrot.lane.b32.xlu0 %v411_v21, %s1555_s27  ;;  %v669_v21 = vrot.slane %v256_v18, 1  ;;  %v781_v37 = vsel %vm774_vm3, %v1718_v46, %v1951_v3 }
  0xf5   : > { %1432 = vmatprep.mubr.msk.f32.mxu0 %vm915_vm11, %v898_v53  ;;  %v798_v1 = vsel %vm791_vm4, %v781_v37, %v1971_v12 }
  0xf6   : > { %v2020_v50 = vpop.permute.xlu1 %530  ;;  %v2022_v57 = vpop.permute.xlu0 %339  ;;  %v672_v25 = vsel %vm282_vm1, %v669_v21, %v671_v30  ;;  %v670_v8 = vsel %vm282_vm1, %v668_v29, %v669_v21  ;;  %v815_v23 = vsel %vm808_vm5, %v798_v1, %v1980_v22 }
  0xf7   : > { %v832_v46 = vsel %vm825_vm6, %v815_v23, %v1996_v39  ;;  %v782_v39 = vsel %vm774_vm3, %v1721_v47, %v1973_v16  ;;  %v783_v9 = vsel %vm774_vm3, %v1753_v59, %v2022_v57 }
  0xf8   : > { %697 = vrot.lane.b32.xlu1 %v513_v55, %s1560_s20  ;;  %645 = vrot.lane.b32.xlu0 %v253_v44, %s1559_s8  ;;  %v799_v56 = vsel %vm791_vm4, %v782_v39, %v1982_v24 }
  0xf9   : > { %v816_v58 = vsel %vm808_vm5, %v799_v56, %v1998_v40 }
  0xfa   : > { %v737_v36 = vpop.permute.xlu1 %736  ;;  %v582_v4 = vpop.permute.xlu0 %581  ;;  %v833_v34 = vsel %vm825_vm6, %v816_v58, %v2020_v50 }
  0xfb   : > { %v899_v42 = vsel %vm893_vm10, %v882_v48, %v737_v36  ;;  %v849_v3 = vsel %vm842_vm7, %v832_v46, %v582_v4 }
  0xfc   : > { %544 = vrot.lane.b32.xlu1 %v513_v55, %s1557_s29  ;;  %492 = vrot.lane.b32.xlu0 %v253_v44, %s1554_s26  ;;  %v721_v44 = vrot.slane %v255_v19, 2  ;;  %s217_s26 = sadd.s32 %s1372_s25, %s1371_s24 }
  0xfd   : > { %1433 = vmatmul.mubr.msk.f32.gmra.mrb[4].mxu0 %vm915_vm11, %v899_v42  ;;  %s1373_s27 = sshll.u32 %s217_s26, 3 }
  0xfe   : > { %v2038_v51 = vpop.permute.xlu1 %428  ;;  %v2040_v6 = vpop.permute.xlu0 %341  ;;  %v723_v53 = vsel %vm371_vm0, %v721_v44, %v722_v38 }
  0xff   : > { %v784_v59 = vsel %vm774_vm3, %v1756_v60, %v2040_v6 }
 0x100   : > { %750 = vrot.lane.b32.xlu1 %v566_v63, %s1561_s23  ;;  %699 = vrot.lane.b32.xlu0 %v515_v5, %s1560_s20 }
 0x102   : > { %v632_v10 = vpop.permute.xlu1 %631  ;;  %v584_v11 = vpop.permute.xlu0 %583 }
 0x103   : > { %v866_v12 = vsel %vm859_vm8, %v849_v3, %v632_v10  ;;  %v850_v61 = vsel %vm842_vm7, %v833_v34, %v584_v11  ;;  %v800_v10 = vsel %vm791_vm4, %v783_v9, %v2038_v51 }
 0x104   : > { %597 = vrot.lane.b32.xlu1 %v566_v63, %s1558_s30  ;;  %546 = vrot.lane.b32.xlu0 %v515_v5, %s1557_s29 }
 0x106   : > { %v479_v13 = vpop.permute.xlu1 %478  ;;  %v2047_v15 = vpop.permute.xlu0 %430 }
 0x107   : > { %v817_v11 = vsel %vm808_vm5, %v800_v10, %v479_v13  ;;  %v801_v57 = vsel %vm791_vm4, %v784_v59, %v2047_v15 }
 0x108   : > { %599 = vrot.lane.b32.xlu1 %v568_v7, %s1558_s30  ;;  %752 = vrot.lane.b32.xlu0 %v568_v7, %s1561_s23  ;;  %s2181_s30 = scalar_lea.vmem %s2269_s2, %s1373_s27 }
 0x10a   : > { %v686_v31 = vpop.permute.xlu1 %685  ;;  %v634_v32 = vpop.permute.xlu0 %633 }
 0x10b   : > { %v883_v45 = vsel %vm876_vm9, %v866_v12, %v686_v31  ;;  %v867_v47 = vsel %vm859_vm8, %v850_v61, %v634_v32 }
 0x10c   : > { %649 = vrot.lane.b32.xlu1 %v256_v18, %s1559_s8  ;;  %647 = vrot.lane.b32.xlu0 %v255_v19, %s1559_s8 }
 0x10e   : > { %v533_v33 = vpop.permute.xlu1 %532  ;;  %v481_v35 = vpop.permute.xlu0 %480 }
 0x10f   : > { %v834_v19 = vsel %vm825_vm6, %v817_v11, %v533_v33  ;;  %v818_v51 = vsel %vm808_vm5, %v801_v57, %v481_v35 }
 0x110   : > { %703 = vrot.lane.b32.xlu1 %v672_v25, %s1560_s20  ;;  %701 = vrot.lane.b32.xlu0 %v670_v8, %s1560_s20 }
 0x112   : > { %v739_v22 = vpop.permute.xlu1 %738  ;;  %v688_v54 = vpop.permute.xlu0 %687 }
 0x113   : > { %v900_v55 = vsel %vm893_vm10, %v883_v45, %v739_v22  ;;  %v884_v16 = vsel %vm876_vm9, %v867_v47, %v688_v54 }
 0x114   : > { %756 = vrot.lane.b32.xlu1 %v725_v41, %s1561_s23  ;;  %754 = vrot.lane.b32.xlu0 %v723_v53, %s1561_s23 }
 0x115   : > { %1435 = vmatprep.mubr.msk.f32.mxu0 %vm915_vm11, %v900_v55 }
 0x116   : > { %v535_v27 = vpop.permute.xlu1 %534  ;;  %v344_v28 = vpop.permute.xlu0 %343 }
 0x117   : > { %v835_v38 = vsel %vm825_vm6, %v818_v51, %v535_v27  ;;  %v785_v41 = vsel %vm774_vm3, %v1790_v14, %v344_v28 }
 0x11a   : > { %v741_v62 = vpop.permute.xlu1 %740  ;;  %v586_v0 = vpop.permute.xlu0 %585 }
 0x11b   : > { %v901_v24 = vsel %vm893_vm10, %v884_v16, %v741_v62  ;;  %v851_v20 = vsel %vm842_vm7, %v834_v19, %v586_v0 }
 0x11c   : > { %1436 = vmatmul.mubr.msk.f32.gmra.mrb[6].mxu0 %vm915_vm11, %v901_v24 }
 0x11e   : > { %v433_v48 = vpop.permute.xlu1 %432  ;;  %v346_v36 = vpop.permute.xlu0 %345 }
 0x11f   : > { %v802_v53 = vsel %vm791_vm4, %v785_v41, %v433_v48  ;;  %v786_v14 = vsel %vm774_vm3, %v1793_v17, %v346_v36 }
 0x122   : > { %v636_v40 = vpop.permute.xlu1 %635  ;;  %v588_v4 = vpop.permute.xlu0 %587 }
 0x123   : > { %v868_v21 = vsel %vm859_vm8, %v851_v20, %v636_v40  ;;  %v852_v44 = vsel %vm842_vm7, %v835_v38, %v588_v4 }
 0x126   : > { %v483_v42 = vpop.permute.xlu1 %482  ;;  %v435_v63 = vpop.permute.xlu0 %434 }
 0x127   : > { %v819_v45 = vsel %vm808_vm5, %v802_v53, %v483_v42  ;;  %v803_v28 = vsel %vm791_vm4, %v786_v14, %v435_v63 }
 0x12a   : > { %v690_v5 = vpop.permute.xlu1 %689  ;;  %v638_v50 = vpop.permute.xlu0 %637 }
 0x12b   : > { %v885_v29 = vsel %vm876_vm9, %v868_v21, %v690_v5  ;;  %v869_v1 = vsel %vm859_vm8, %v852_v44, %v638_v50 }
 0x12e   : > { %v537_v7 = vpop.permute.xlu1 %536  ;;  %v485_v18 = vpop.permute.xlu0 %484 }
 0x12f   : > { %v836_v55 = vsel %vm825_vm6, %v819_v45, %v537_v7  ;;  %v820_v47 = vsel %vm808_vm5, %v803_v28, %v485_v18 }
 0x132   : > { %v743_v30 = vpop.permute.xlu1 %742  ;;  %v692_v31 = vpop.permute.xlu0 %691 }
 0x133   : > { %v902_v32 = vsel %vm893_vm10, %v885_v29, %v743_v30  ;;  %v886_v25 = vsel %vm876_vm9, %v869_v1, %v692_v31 }
 0x134   : > { %1438 = vmatprep.mubr.msk.f32.mxu1 %vm915_vm11, %v902_v32 }
 0x136   : > { %v539_v13 = vpop.permute.xlu1 %538  ;;  %v348_v37 = vpop.permute.xlu0 %347 }
 0x137   : > { %v837_v0 = vsel %vm825_vm6, %v820_v47, %v539_v13  ;;  %v787_v18 = vsel %vm774_vm3, %v1840_v49, %v348_v37 }
 0x13a   : > { %v745_v8 = vpop.permute.xlu1 %744  ;;  %v590_v26 = vpop.permute.xlu0 %589 }
 0x13b   : > { %v903_v60 = vsel %vm893_vm10, %v886_v25, %v745_v8  ;;  %v853_v39 = vsel %vm842_vm7, %v836_v55, %v590_v26 }
 0x13c   : > { %1439 = vmatmul.mubr.msk.f32.vlgmr.msra.gmra.mrb[0].mxu1 %vm915_vm11, %v903_v60 }
 0x13e   : > { %v437_v6 = vpop.permute.xlu1 %436  ;;  %v350_v15 = vpop.permute.xlu0 %349 }
 0x13f   : > { %v804_v19 = vsel %vm791_vm4, %v787_v18, %v437_v6  ;;  %v788_v49 = vsel %vm774_vm3, %v1848_v52, %v350_v15 }
 0x142   : > { %v640_v23 = vpop.permute.xlu1 %639  ;;  %v592_v33 = vpop.permute.xlu0 %591 }
 0x143   : > { %v870_v56 = vsel %vm859_vm8, %v853_v39, %v640_v23  ;;  %v854_v24 = vsel %vm842_vm7, %v837_v0, %v592_v33 }
 0x146   : > { %v487_v35 = vpop.permute.xlu1 %486  ;;  %v439_v46 = vpop.permute.xlu0 %438 }
 0x147   : > { %v821_v20 = vsel %vm808_vm5, %v804_v19, %v487_v35  ;;  %v805_v37 = vsel %vm791_vm4, %v788_v49, %v439_v46 }
 0x14a   : > { %v694_v3 = vpop.permute.xlu1 %693  ;;  %v642_v12 = vpop.permute.xlu0 %641 }
 0x14b   : > { %v887_v58 = vsel %vm876_vm9, %v870_v56, %v694_v3  ;;  %v871_v48 = vsel %vm859_vm8, %v854_v24, %v642_v12 }
 0x14e   : > { %v541_v22 = vpop.permute.xlu1 %540  ;;  %v489_v54 = vpop.permute.xlu0 %488 }
 0x14f   : > { %v838_v30 = vsel %vm825_vm6, %v821_v20, %v541_v22  ;;  %v822_v38 = vsel %vm808_vm5, %v805_v37, %v489_v54 }
 0x152   : > { %v747_v27 = vpop.permute.xlu1 %746  ;;  %v696_v34 = vpop.permute.xlu0 %695 }
 0x153   : > { %v904_v61 = vsel %vm893_vm10, %v887_v58, %v747_v27  ;;  %v888_v40 = vsel %vm876_vm9, %v871_v48, %v696_v34 }
 0x154   : > { %1441 = vmatprep.mubr.msk.f32.mxu1 %vm915_vm11, %v904_v61 }
 0x156   : > { %v543_v16 = vpop.permute.xlu1 %542  ;;  %v352_v62 = vpop.permute.xlu0 %351 }
 0x157   : > { %v839_v25 = vsel %vm825_vm6, %v822_v38, %v543_v16  ;;  %v789_v35 = vsel %vm774_vm3, %v1915_v43, %v352_v62 }
 0x15a   : > { %v749_v4 = vpop.permute.xlu1 %748  ;;  %v594_v42 = vpop.permute.xlu0 %593 }
 0x15b   : > { %v905_v17 = vsel %vm893_vm10, %v888_v40, %v749_v4  ;;  %v855_v31 = vsel %vm842_vm7, %v838_v30, %v594_v42 }
 0x15c   : > { %1442 = vmatmul.mubr.msk.f32.gmra.mrb[2].mxu1 %vm915_vm11, %v905_v17 }
 0x15e   : > { %v441_v36 = vpop.permute.xlu1 %440  ;;  %v354_v63 = vpop.permute.xlu0 %353 }
 0x15f   : > { %v790_v46 = vsel %vm774_vm3, %v1924_v2, %v354_v63  ;;  %v806_v3 = vsel %vm791_vm4, %v789_v35, %v441_v36 }
 0x162   : > { %v644_v5 = vpop.permute.xlu1 %643  ;;  %v596_v50 = vpop.permute.xlu0 %595 }
 0x163   : > { %v872_v32 = vsel %vm859_vm8, %v855_v31, %v644_v5  ;;  %v856_v8 = vsel %vm842_vm7, %v839_v25, %v596_v50 }
 0x166   : > { %v491_v9 = vpop.permute.xlu1 %490  ;;  %v443_v10 = vpop.permute.xlu0 %442 }
 0x167   : > { %v807_v12 = vsel %vm791_vm4, %v790_v46, %v443_v10  ;;  %v823_v41 = vsel %vm808_vm5, %v806_v3, %v491_v9 }
 0x16a   : > { %v698_v11 = vpop.permute.xlu1 %697  ;;  %v646_v7 = vpop.permute.xlu0 %645 }
 0x16b   : > { %v889_v59 = vsel %vm876_vm9, %v872_v32, %v698_v11  ;;  %v873_v26 = vsel %vm859_vm8, %v856_v8, %v646_v7 }
 0x16e   : > { %v545_v21 = vpop.permute.xlu1 %544  ;;  %v493_v29 = vpop.permute.xlu0 %492 }
 0x16f   : > { %v824_v53 = vsel %vm808_vm5, %v807_v12, %v493_v29  ;;  %v840_v54 = vsel %vm825_vm6, %v823_v41, %v545_v21 }
 0x172   : > { %v751_v57 = vpop.permute.xlu1 %750  ;;  %v700_v51 = vpop.permute.xlu0 %699 }
 0x173   : > { %v906_v13 = vsel %vm893_vm10, %v889_v59, %v751_v57  ;;  %v890_v60 = vsel %vm876_vm9, %v873_v26, %v700_v51 }
 0x174   : > { %1444 = vmatprep.mubr.msk.f32.mxu1 %vm915_vm11, %v906_v13 }
 0x176   : > { %v598_v44 = vpop.permute.xlu1 %597  ;;  %v547_v1 = vpop.permute.xlu0 %546 }
 0x177   : > { %v841_v55 = vsel %vm825_vm6, %v824_v53, %v547_v1  ;;  %v857_v39 = vsel %vm842_vm7, %v840_v54, %v598_v44 }
 0x17a   : > { %v600_v6 = vpop.permute.xlu1 %599  ;;  %v753_v23 = vpop.permute.xlu0 %752 }
 0x17b   : > { %v907_v52 = vsel %vm893_vm10, %v890_v60, %v753_v23  ;;  %v858_v43 = vsel %vm842_vm7, %v841_v55, %v600_v6 }
 0x17c   : > { %1445 = vmatmul.mubr.msk.f32.gmra.mrb[4].mxu1 %vm915_vm11, %v907_v52 }
 0x17e   : > { %v650_v15 = vpop.permute.xlu1 %649  ;;  %v648_v33 = vpop.permute.xlu0 %647 }
 0x17f   : > { %v875_v2 = vsel %vm859_vm8, %v858_v43, %v650_v15  ;;  %v874_v56 = vsel %vm859_vm8, %v857_v39, %v648_v33 }
 0x182   : > { %v704_v45 = vpop.permute.xlu1 %703  ;;  %v702_v22 = vpop.permute.xlu0 %701 }
 0x183   : > { %v892_v58 = vsel %vm876_vm9, %v875_v2, %v704_v45  ;;  %v891_v27 = vsel %vm876_vm9, %v874_v56, %v702_v22 }
 0x186   : > { %v757_v34 = vpop.permute.xlu1 %756  ;;  %v755_v61 = vpop.permute.xlu0 %754 }
 0x187   : > { %v909_v14 = vsel %vm893_vm10, %v892_v58, %v757_v34  ;;  %v908_v28 = vsel %vm893_vm10, %v891_v27, %v755_v61 }
 0x188   : > { %1447 = vmatprep.mubr.msk.f32.mxu1 %vm915_vm11, %v908_v28 }
 0x189   : > { %1448 = vmatmul.mubr.msk.f32.gmra.mrb[6].mxu1 %vm915_vm11, %v909_v14 }
 0x190   : > { %v1428_v47 = vpop.f32.mrb[0].mxu0 }
 0x191   : > { %v1114_v16 = vsel %vm893_vm10, %v1428_v47, 0.0  ;;  %v1151_v62 = vmul.f32 %v1428_v47, %v1428_v47  ;;  %1208 = vst.msk [vmem:[%s2181_s30 + $0x8] sm:$0xff] %vm893_vm10, %v1428_v47  ;;  %v1034_v0 = vpop.f32.mrb[1].mxu0 }
 0x192   : > { %v1113_v24 = vsel %vm893_vm10, %v1034_v0, 0.0  ;;  %v1150_v48 = vmul.f32 %v1034_v0, %v1034_v0  ;;  %1207 = vst.msk [vmem:[%s2181_s30] sm:$0xff] %vm893_vm10, %v1034_v0 }
 0x193   : > { %v1167_v40 = vsel %vm893_vm10, %v1151_v62, 0.0  ;;  %v1115_v4 = vadd.f32 %v1114_v16, %v1113_v24 }
 0x194   : > { %v1166_v42 = vsel %vm893_vm10, %v1150_v48, 0.0 }
 0x195   : > { %v1168_v17 = vadd.f32 %v1167_v40, %v1166_v42 }
 0x1b0   : > { %v1431_v36 = vpop.f32.mrb[2].mxu0 }
 0x1b1   : > { %1210 = vst.msk [vmem:[%s2181_s30 + $0x18] sm:$0xff] %vm893_vm10, %v1431_v36  ;;  %v1044_v63 = vpop.f32.mrb[3].mxu0  ;;  %v1153_v5 = vmul.f32 %v1431_v36, %v1431_v36  ;;  %v1118_v11 = vsel %vm893_vm10, %v1431_v36, 0.0 }
 0x1b2   : > { %v1116_v50 = vsel %vm893_vm10, %v1044_v63, 0.0  ;;  %v1152_v9 = vmul.f32 %v1044_v63, %v1044_v63  ;;  %1209 = vst.msk [vmem:[%s2181_s30 + $0x10] sm:$0xff] %vm893_vm10, %v1044_v63 }
 0x1b3   : > { %v1117_v10 = vadd.f32 %v1116_v50, %v1115_v4  ;;  %v1171_v20 = vsel %vm893_vm10, %v1153_v5, 0.0 }
 0x1b4   : > { %v1169_v7 = vsel %vm893_vm10, %v1152_v9, 0.0 }
 0x1b5   : > { %v1170_v18 = vadd.f32 %v1169_v7, %v1168_v17  ;;  %v1119_v19 = vadd.f32 %v1118_v11, %v1117_v10 }
 0x1b7   : > { %v1172_v21 = vadd.f32 %v1171_v20, %v1170_v18 }
 0x1d0   : > { %v1434_v29 = vpop.f32.mrb[4].mxu0 }
 0x1d1   : > { %1212 = vst.msk [vmem:[%s2181_s30 + $0x28] sm:$0xff] %vm893_vm10, %v1434_v29  ;;  %v1054_v30 = vpop.f32.mrb[5].mxu0  ;;  %v1155_v31 = vmul.f32 %v1434_v29, %v1434_v29  ;;  %v1122_v51 = vsel %vm893_vm10, %v1434_v29, 0.0 }
 0x1d2   : > { %v1120_v32 = vsel %vm893_vm10, %v1054_v30, 0.0  ;;  %v1154_v59 = vmul.f32 %v1054_v30, %v1054_v30  ;;  %1211 = vst.msk [vmem:[%s2181_s30 + $0x20] sm:$0xff] %vm893_vm10, %v1054_v30 }
 0x1d3   : > { %v1121_v57 = vadd.f32 %v1120_v32, %v1119_v19  ;;  %v1175_v38 = vsel %vm893_vm10, %v1155_v31, 0.0 }
 0x1d4   : > { %v1173_v13 = vsel %vm893_vm10, %v1154_v59, 0.0 }
 0x1d5   : > { %v1174_v49 = vadd.f32 %v1173_v13, %v1172_v21  ;;  %v1123_v37 = vadd.f32 %v1122_v51, %v1121_v57 }
 0x1d7   : > { %v1176_v44 = vadd.f32 %v1175_v38, %v1174_v49 }
 0x1ef   : > { %v1437_v1 = vpop.f32.mrb[6].mxu0 }
 0x1f0   : > { %1214 = vst.msk [vmem:[%s2181_s30 + $0x38] sm:$0xff] %vm893_vm10, %v1437_v1  ;;  %v1064_v25 = vpop.f32.mrb[7].mxu0  ;;  %v1157_v8 = vmul.f32 %v1437_v1, %v1437_v1  ;;  %v1126_v23 = vsel %vm893_vm10, %v1437_v1, 0.0 }
 0x1f1   : > { %v1124_v26 = vsel %vm893_vm10, %v1064_v25, 0.0  ;;  %v1156_v60 = vmul.f32 %v1064_v25, %v1064_v25  ;;  %1213 = vst.msk [vmem:[%s2181_s30 + $0x30] sm:$0xff] %vm893_vm10, %v1064_v25 }
 0x1f2   : > { %v1125_v6 = vadd.f32 %v1124_v26, %v1123_v37  ;;  %v1179_v35 = vsel %vm893_vm10, %v1157_v8, 0.0 }
 0x1f3   : > { %v1177_v52 = vsel %vm893_vm10, %v1156_v60, 0.0 }
 0x1f4   : > { %v1127_v15 = vadd.f32 %v1126_v23, %v1125_v6  ;;  %v1178_v33 = vadd.f32 %v1177_v52, %v1176_v44 }
 0x1f6   : > { %v1180_v46 = vadd.f32 %v1179_v35, %v1178_v33 }
 0x20f   : > { %v1440_v3 = vpop.f32.mrb[0].mxu1 }
 0x210   : > { %1216 = vst.msk [vmem:[%s2181_s30 + $0x48] sm:$0xff] %vm893_vm10, %v1440_v3  ;;  %v1074_v12 = vpop.f32.mrb[1].mxu1  ;;  %v1159_v41 = vmul.f32 %v1440_v3, %v1440_v3  ;;  %v1130_v54 = vsel %vm893_vm10, %v1440_v3, 0.0 }
 0x211   : > { %v1128_v53 = vsel %vm893_vm10, %v1074_v12, 0.0  ;;  %v1158_v45 = vmul.f32 %v1074_v12, %v1074_v12  ;;  %1215 = vst.msk [vmem:[%s2181_s30 + $0x40] sm:$0xff] %vm893_vm10, %v1074_v12 }
 0x212   : > { %v1129_v22 = vadd.f32 %v1128_v53, %v1127_v15  ;;  %v1183_v2 = vsel %vm893_vm10, %v1159_v41, 0.0 }
 0x213   : > { %v1181_v55 = vsel %vm893_vm10, %v1158_v45, 0.0 }
 0x214   : > { %v1182_v39 = vadd.f32 %v1181_v55, %v1180_v46  ;;  %v1131_v43 = vadd.f32 %v1130_v54, %v1129_v22 }
 0x216   : > { %v1184_v56 = vadd.f32 %v1183_v2, %v1182_v39 }
 0x22f   : > { %v1443_v58 = vpop.f32.mrb[2].mxu1 }
 0x230   : > { %1218 = vst.msk [vmem:[%s2181_s30 + $0x58] sm:$0xff] %vm893_vm10, %v1443_v58  ;;  %v1084_v27 = vpop.f32.mrb[3].mxu1  ;;  %v1161_v34 = vmul.f32 %v1443_v58, %v1443_v58  ;;  %v1134_v47 = vsel %vm893_vm10, %v1443_v58, 0.0 }
 0x231   : > { %v1132_v61 = vsel %vm893_vm10, %v1084_v27, 0.0  ;;  %v1160_v14 = vmul.f32 %v1084_v27, %v1084_v27  ;;  %1217 = vst.msk [vmem:[%s2181_s30 + $0x50] sm:$0xff] %vm893_vm10, %v1084_v27 }
 0x232   : > { %v1133_v28 = vadd.f32 %v1132_v61, %v1131_v43  ;;  %v1187_v24 = vsel %vm893_vm10, %v1161_v34, 0.0 }
 0x233   : > { %v1185_v16 = vsel %vm893_vm10, %v1160_v14, 0.0 }
 0x234   : > { %v1186_v62 = vadd.f32 %v1185_v16, %v1184_v56  ;;  %v1135_v0 = vadd.f32 %v1134_v47, %v1133_v28 }
 0x236   : > { %v1188_v48 = vadd.f32 %v1187_v24, %v1186_v62 }
 0x24f   : > { %v1446_v40 = vpop.f32.mrb[4].mxu1 }
 0x250   : > { %1220 = vst.msk [vmem:[%s2181_s30 + $0x68] sm:$0xff] %vm893_vm10, %v1446_v40  ;;  %v1094_v4 = vpop.f32.mrb[5].mxu1  ;;  %v1163_v42 = vmul.f32 %v1446_v40, %v1446_v40  ;;  %v1138_v5 = vsel %vm893_vm10, %v1446_v40, 0.0 }
 0x251   : > { %v1136_v17 = vsel %vm893_vm10, %v1094_v4, 0.0  ;;  %v1162_v36 = vmul.f32 %v1094_v4, %v1094_v4  ;;  %1219 = vst.msk [vmem:[%s2181_s30 + $0x60] sm:$0xff] %vm893_vm10, %v1094_v4 }
 0x252   : > { %v1137_v63 = vadd.f32 %v1136_v17, %v1135_v0  ;;  %v1191_v11 = vsel %vm893_vm10, %v1163_v42, 0.0 }
 0x253   : > { %v1189_v50 = vsel %vm893_vm10, %v1162_v36, 0.0 }
 0x254   : > { %v1190_v9 = vadd.f32 %v1189_v50, %v1188_v48  ;;  %v1139_v10 = vadd.f32 %v1138_v5, %v1137_v63 }
 0x256   : > { %v1192_v7 = vadd.f32 %v1191_v11, %v1190_v9 }
 0x25c   : > { %v1449_v18 = vpop.f32.mrb[6].mxu1 }
 0x25d   : > { %1222 = vst.msk [vmem:[%s2181_s30 + $0x78] sm:$0xff] %vm893_vm10, %v1449_v18  ;;  %v1104_v19 = vpop.f32.mrb[7].mxu1  ;;  %v1165_v20 = vmul.f32 %v1449_v18, %v1449_v18  ;;  %v1142_v31 = vsel %vm893_vm10, %v1449_v18, 0.0 }
 0x25e   : > { %v1140_v21 = vsel %vm893_vm10, %v1104_v19, 0.0  ;;  %v1164_v29 = vmul.f32 %v1104_v19, %v1104_v19  ;;  %1221 = vst.msk [vmem:[%s2181_s30 + $0x70] sm:$0xff] %vm893_vm10, %v1104_v19 }
 0x25f   : > { %v1141_v30 = vadd.f32 %v1140_v21, %v1139_v10  ;;  %v1195_v51 = vsel %vm893_vm10, %v1165_v20, 0.0 }
 0x260   : > { %v1193_v32 = vsel %vm893_vm10, %v1164_v29, 0.0 }
 0x261   : > { %v1143_v59 = vadd.f32 %v1142_v31, %v1141_v30  ;;  %v1194_v57 = vadd.f32 %v1193_v32, %v1192_v7 }
 0x263   : > { %v1144_v13 = vrot.slane %v1143_v59, 4  ;;  %v1196_v49 = vadd.f32 %v1195_v51, %v1194_v57 }
 0x265   : > { %v1145_v37 = vadd.f32 %v1144_v13, %v1143_v59  ;;  %v1197_v38 = vrot.slane %v1196_v49, 4 }
 0x267   : > { %v1146_v44 = vrot.slane %v1145_v37, 2  ;;  %v1198_v1 = vadd.f32 %v1197_v38, %v1196_v49 }
 0x269   : > { %v1147_v25 = vadd.f32 %v1146_v44, %v1145_v37  ;;  %v1199_v8 = vrot.slane %v1198_v1, 2 }
 0x26b   : > { %v1148_v26 = vrot.slane %v1147_v25, 1  ;;  %v1200_v60 = vadd.f32 %v1199_v8, %v1198_v1 }
 0x26d   : > { %v1201_v6 = vrot.slane %v1200_v60, 1  ;;  %v1149_v23 = vadd.f32 %v1148_v26, %v1147_v25 }
 0x26f   : > { %v1202_v52 = vadd.f32 %v1201_v6, %v1200_v60 }
 0x271   : > { %v1204_v15 = vsel %vm1203_vm12, %v1149_v23, %v1202_v52 }
 0x272   : > { %1206 = vst.msk [vmem:[%s227_s9] sm:$0x3] %vm1205_vm13, %v1204_v15 }
 0x273 PF: > { %s14_s16 = sadd.s32 1, %s1552_s16   ;;  %s2271_s12 = smov %s1544_s14 }
 0x274   : > { %p11_p7 = scmp.ge.s32.totalorder %s14_s16, 6   ;;  %s2272_s13 = smov %s1548_s15 }
 0x275   : > { %s2273_s14 = smov %s2276_s17  ;;  %s2274_s15 = smov %s2280_s18 }
 0x276   :  { %13 = sbr.rel (!%p11_p7) target bundleno = 3 (0x3), region = 70 }

</bundles_post_ra>
